<compile_context>
chip_gen: v7x
topology: tpu7x:2x2x1
jax: 0.10.0
libtpu: 0.0.40
codegen_flags: <defaults>
</compile_context>

<pallas_src>
import functools

import jax
import jax.numpy as jnp
from jax.experimental import pallas as pl
from jax.experimental.pallas import tpu as pltpu


# ---------------------------------------------------------------------------
# Pallas kernel (single invocation, whole sequence resident in VMEM)
# ---------------------------------------------------------------------------
def _lstm_net_kernel(num_layers, T, B, H, x_ref, *refs):
    """refs = [w_ih_l, w_hh_l, b_l] * num_layers + [out_ref, seq_scr, gates_scr].

    x_ref     : (T*B, D)      time-major flattened input sequence
    w_ih_l    : (D_in, 4H)    transposed input-projection weight of layer l
    w_hh_l    : (H, 4H)       transposed recurrent weight of layer l
    b_l       : (1, 4H)       fused bias  b_ih + b_hh
    out_ref   : (B, H)        last-timestep hidden state of the top layer
    seq_scr   : (T*B, H)      current layer's output sequence (next layer's input)
    gates_scr : (T*B, 4H)     hoisted input-projection pre-activations
    """
    layer_refs = refs[:3 * num_layers]
    out_ref = refs[3 * num_layers]
    seq_scr, gates_scr = refs[3 * num_layers + 1:]

    h = None
    for l in range(num_layers):                       # static & small -> unrolled
        # Hoisted input projection: one big M=T*B matmul instead of T tiny M=B ones.
        # w_ih / fused bias are consumed exactly once here (not held across the loop).
        inp_seq = x_ref[...] if l == 0 else seq_scr[...]
        gates_scr[...] = (
            jnp.dot(inp_seq, layer_refs[3 * l][...],
                    preferred_element_type=jnp.float32)
            + layer_refs[3 * l + 2][...])

        # Only the recurrent weight stays live in vregs across the time loop.
        w_hh = layer_refs[3 * l + 1][...]             # (H, 4H)

        # Sequential recurrence: only  h @ W_hh  is on the serial critical path.
        h = jnp.zeros((B, H), jnp.float32)
        c = jnp.zeros((B, H), jnp.float32)
        # T is small & static here, so a fully unrolled loop with tile-aligned static
        # slices is ideal.  TODO(synk): for long sequences switch to lax.fori_loop over
        # t with pl.ds(pl.multiple_of(t * B, 8), B) dynamic slices.
        for t in range(T):
            lo = t * B                                # multiple of 8 -> tile aligned
            g = gates_scr[lo:lo + B, :] + jnp.dot(
                h, w_hh, preferred_element_type=jnp.float32)
            # PyTorch gate order along 4H: [i, f, g, o].  Apply the transcendentals on
            # the full lane-dense (B, 4H) vreg once, then slice the chunks (2 EUP ops
            # per step instead of 4).
            sig = jax.nn.sigmoid(g)
            tnh = jnp.tanh(g)
            i_g = sig[:, 0 * H:1 * H]
            f_g = sig[:, 1 * H:2 * H]
            g_g = tnh[:, 2 * H:3 * H]
            o_g = sig[:, 3 * H:4 * H]
            c = f_g * c + i_g * g_g
            h = o_g * jnp.tanh(c)
            if l < num_layers - 1:                    # last layer: only h(T-1) needed
                seq_scr[lo:lo + B, :] = h

    out_ref[...] = h


# ---------------------------------------------------------------------------
# Wrapper
# ---------------------------------------------------------------------------
def lstm_net_forward(x, params):
    """x: [B, T, D] float32 (batch_first, like the PyTorch module). Returns [B, 1]."""
    B, T, D = x.shape
    num_layers = len(params["w_ih"])
    H = params["w_hh"][0].shape[1]                    # w_hh is (4H, H)

    # Pad batch to a full f32 sublane tile (8 rows): keeps per-timestep slices
    # tile-aligned and avoids half-empty vregs / MXU rows.
    B_pad = max(8, ((B + 7) // 8) * 8)

    x_tbd = jnp.transpose(x, (1, 0, 2)).astype(jnp.float32)      # (T, B, D)
    if B_pad != B:
        x_tbd = jnp.pad(x_tbd, ((0, 0), (0, B_pad - B), (0, 0)))
    x_flat = x_tbd.reshape(T * B_pad, D)                         # (T*B_pad, D)

    operands = [x_flat]
    for l in range(num_layers):
        operands.append(params["w_ih"][l].T.astype(jnp.float32))          # (D_in, 4H)
        operands.append(params["w_hh"][l].T.astype(jnp.float32))          # (H, 4H)
        operands.append(
            (params["b_ih"][l] + params["b_hh"][l])
            .reshape(1, 4 * H).astype(jnp.float32))                       # (1, 4H)

    kernel = functools.partial(_lstm_net_kernel, num_layers, T, B_pad, H)
    vmem_spec = pl.BlockSpec(memory_space=pltpu.MemorySpace.VMEM)

    h_last = pl.pallas_call(
        kernel,
        out_shape=jax.ShapeDtypeStruct((B_pad, H), jnp.float32),
        in_specs=[vmem_spec] * len(operands),
        out_specs=vmem_spec,
        scratch_shapes=[
            pltpu.VMEM((T * B_pad, H), jnp.float32),       # layer output sequence
            pltpu.VMEM((T * B_pad, 4 * H), jnp.float32),   # hoisted gate pre-acts
        ],
    )(*operands)

    # Final Linear(hidden -> 1) on out[:, -1, :]: an N=1 matmul / 1-lane masked store
    # is wasted MXU work and a non-lane-dense store inside the kernel, so it runs as a
    # single tiny fused XLA dot here.
    h_last = h_last[:B]
    return (h_last @ params["w_fc"].T.astype(jnp.float32)
            + params["b_fc"].astype(jnp.float32))


# ---------------------------------------------------------------------------
# Pure-JAX reference (mirrors torch.nn.LSTM semantics) for verification
# ---------------------------------------------------------------------------
def lstm_net_reference(x, params):
    B, T, D = x.shape
    num_layers = len(params["w_ih"])
    H = params["w_hh"][0].shape[1]
    h = [jnp.zeros((B, H), jnp.float32) for _ in range(num_layers)]
    c = [jnp.zeros((B, H), jnp.float32) for _ in range(num_layers)]
    for t in range(T):
        inp = x[:, t, :]
        for l in range(num_layers):
            gates = (inp @ params["w_ih"][l].T + params["b_ih"][l]
                     + h[l] @ params["w_hh"][l].T + params["b_hh"][l])
            i_, f_, g_, o_ = jnp.split(gates, 4, axis=-1)
            i_ = jax.nn.sigmoid(i_)
            f_ = jax.nn.sigmoid(f_)
            g_ = jnp.tanh(g_)
            o_ = jax.nn.sigmoid(o_)
            c[l] = f_ * c[l] + i_ * g_
            h[l] = o_ * jnp.tanh(c[l])
            inp = h[l]
    return inp @ params["w_fc"].T + params["b_fc"]


# ---------------------------------------------------------------------------
# Deterministic parameter init (shapes match nn.LSTM / nn.Linear)
# ---------------------------------------------------------------------------
def init_params(key, input_size, hidden_size, num_layers):
    k = 1.0 / jnp.sqrt(jnp.float32(hidden_size))
    params = {"w_ih": [], "w_hh": [], "b_ih": [], "b_hh": []}
    for l in range(num_layers):
        d_in = input_size if l == 0 else hidden_size
        key, k1, k2, k3, k4 = jax.random.split(key, 5)
        params["w_ih"].append(jax.random.uniform(k1, (4 * hidden_size, d_in),
                                                 jnp.float32, -k, k))
        params["w_hh"].append(jax.random.uniform(k2, (4 * hidden_size, hidden_size),
                                                 jnp.float32, -k, k))
        params["b_ih"].append(jax.random.uniform(k3, (4 * hidden_size,),
                                                 jnp.float32, -k, k))
        params["b_hh"].append(jax.random.uniform(k4, (4 * hidden_size,),
                                                 jnp.float32, -k, k))
    key, k5, k6 = jax.random.split(key, 3)
    params["w_fc"] = jax.random.uniform(k5, (1, hidden_size), jnp.float32, -k, k)
    params["b_fc"] = jax.random.uniform(k6, (1,), jnp.float32, -k, k)
    return params


if __name__ == "__main__":
    B, T, D, H, L = 4, 8, 8, 32, 2  # batch, seq, input_size, hidden_size, num_layers

    root = jax.random.PRNGKey(0)
    kx, kp = jax.random.split(root)
    x = jax.random.normal(kx, (B, T, D), jnp.float32)
    params = init_params(kp, D, H, L)

    out = lstm_net_forward(x, params)
    out = jax.block_until_ready(out)

    ref = lstm_net_reference(x, params)
    assert out.shape == (B, 1), out.shape
    assert jnp.allclose(out, ref, atol=1e-5, rtol=1e-5), (out, ref)

    print("KERNEL_OK")
</pallas_src>

<mosaic_0001>
module attributes {stable_mosaic.version = 11 : i64} {
  func.func @_lstm_net_kernel(%arg0: memref<64x8xf32, #tpu.memory_space<vmem>>, %arg1: memref<8x128xf32, #tpu.memory_space<vmem>>, %arg2: memref<32x128xf32, #tpu.memory_space<vmem>>, %arg3: memref<1x128xf32, #tpu.memory_space<vmem>>, %arg4: memref<32x128xf32, #tpu.memory_space<vmem>>, %arg5: memref<32x128xf32, #tpu.memory_space<vmem>>, %arg6: memref<1x128xf32, #tpu.memory_space<vmem>>, %arg7: memref<8x32xf32, #tpu.memory_space<vmem>>, %arg8: memref<64x32xf32, #tpu.memory_space<vmem>>, %arg9: memref<64x128xf32, #tpu.memory_space<vmem>>) attributes {dimension_semantics = [], scalar_prefetch = 0 : i64, scratch_operands = 2 : i64, tpu.core_type = #tpu.core_type<tc>} {
    %c0 = arith.constant 0 : index
    %c0_0 = arith.constant 0 : index
    %0 = vector.load %arg0[%c0, %c0_0] : memref<64x8xf32, #tpu.memory_space<vmem>>, vector<64x8xf32>
    %c0_1 = arith.constant 0 : index
    %c0_2 = arith.constant 0 : index
    %1 = vector.load %arg1[%c0_1, %c0_2] : memref<8x128xf32, #tpu.memory_space<vmem>>, vector<8x128xf32>
    %cst = arith.constant dense<0.000000e+00> : vector<64x128xf32>
    %2 = tpu.matmul %0, %1, %cst {dimension_numbers = #tpu.dot_dimension_numbers<[1], [0], [0], [1], [0, 0, 1, 1], [], []>} : vector<64x8xf32>, vector<8x128xf32>, vector<64x128xf32> -> vector<64x128xf32>
    %c0_3 = arith.constant 0 : index
    %c0_4 = arith.constant 0 : index
    %3 = vector.load %arg3[%c0_3, %c0_4] : memref<1x128xf32, #tpu.memory_space<vmem>>, vector<1x128xf32>
    %4 = vector.broadcast %3 : vector<1x128xf32> to vector<64x128xf32>
    %5 = arith.addf %2, %4 : vector<64x128xf32>
    %c0_5 = arith.constant 0 : index
    %c0_6 = arith.constant 0 : index
    %6 = vector.load %arg9[%c0_5, %c0_6] : memref<64x128xf32, #tpu.memory_space<vmem>>, vector<64x128xf32>
    tpu.vector_store %arg9[%c0_5, %c0_6], %5 {strides = array<i32>} : memref<64x128xf32, #tpu.memory_space<vmem>>, vector<64x128xf32>,
    %c0_7 = arith.constant 0 : index
    %c0_8 = arith.constant 0 : index
    %7 = vector.load %arg2[%c0_7, %c0_8] : memref<32x128xf32, #tpu.memory_space<vmem>>, vector<32x128xf32>
    %cst_9 = arith.constant 0.000000e+00 : f32
    %8 = vector.broadcast %cst_9 : f32 to vector<8x32xf32>
    %cst_10 = arith.constant 0.000000e+00 : f32
    %9 = vector.broadcast %cst_10 : f32 to vector<8x32xf32>
    %c0_11 = arith.constant 0 : index
    %c0_12 = arith.constant 0 : index
    %10 = vector.load %arg9[%c0_11, %c0_12] : memref<64x128xf32, #tpu.memory_space<vmem>>, vector<8x128xf32>
    %cst_13 = arith.constant dense<0.000000e+00> : vector<8x128xf32>
    %11 = tpu.matmul %8, %7, %cst_13 {dimension_numbers = #tpu.dot_dimension_numbers<[1], [0], [0], [1], [0, 0, 1, 1], [], []>} : vector<8x32xf32>, vector<32x128xf32>, vector<8x128xf32> -> vector<8x128xf32>
    %12 = arith.addf %10, %11 : vector<8x128xf32>
    %13 = arith.negf %12 : vector<8x128xf32>
    %14 = math.exp %13 : vector<8x128xf32>
    %cst_14 = arith.constant 1.000000e+00 : f32
    %15 = vector.broadcast %cst_14 : f32 to vector<8x128xf32>
    %16 = arith.addf %15, %14 : vector<8x128xf32>
    %17 = arith.divf %15, %16 : vector<8x128xf32>
    %18 = math.tanh %12 : vector<8x128xf32>
    %19 = vector.extract_strided_slice %17 {offsets = [0, 0], sizes = [8, 32], strides = [1, 1]} : vector<8x128xf32> to vector<8x32xf32>
    %20 = vector.extract_strided_slice %17 {offsets = [0, 32], sizes = [8, 32], strides = [1, 1]} : vector<8x128xf32> to vector<8x32xf32>
    %21 = vector.extract_strided_slice %18 {offsets = [0, 64], sizes = [8, 32], strides = [1, 1]} : vector<8x128xf32> to vector<8x32xf32>
    %22 = vector.extract_strided_slice %17 {offsets = [0, 96], sizes = [8, 32], strides = [1, 1]} : vector<8x128xf32> to vector<8x32xf32>
    %23 = arith.mulf %20, %9 : vector<8x32xf32>
    %24 = arith.mulf %19, %21 : vector<8x32xf32>
    %25 = arith.addf %23, %24 : vector<8x32xf32>
    %26 = math.tanh %25 : vector<8x32xf32>
    %27 = arith.mulf %22, %26 : vector<8x32xf32>
    %c0_15 = arith.constant 0 : index
    %c0_16 = arith.constant 0 : index
    %28 = vector.load %arg8[%c0_15, %c0_16] : memref<64x32xf32, #tpu.memory_space<vmem>>, vector<8x32xf32>
    tpu.vector_store %arg8[%c0_15, %c0_16], %27 {strides = array<i32>} : memref<64x32xf32, #tpu.memory_space<vmem>>, vector<8x32xf32>,
    %c8 = arith.constant 8 : index
    %c0_17 = arith.constant 0 : index
    %29 = vector.load %arg9[%c8, %c0_17] : memref<64x128xf32, #tpu.memory_space<vmem>>, vector<8x128xf32>
    %cst_18 = arith.constant dense<0.000000e+00> : vector<8x128xf32>
    %30 = tpu.matmul %27, %7, %cst_18 {dimension_numbers = #tpu.dot_dimension_numbers<[1], [0], [0], [1], [0, 0, 1, 1], [], []>} : vector<8x32xf32>, vector<32x128xf32>, vector<8x128xf32> -> vector<8x128xf32>
    %31 = arith.addf %29, %30 : vector<8x128xf32>
    %32 = arith.negf %31 : vector<8x128xf32>
    %33 = math.exp %32 : vector<8x128xf32>
    %cst_19 = arith.constant 1.000000e+00 : f32
    %34 = vector.broadcast %cst_19 : f32 to vector<8x128xf32>
    %35 = arith.addf %34, %33 : vector<8x128xf32>
    %36 = arith.divf %34, %35 : vector<8x128xf32>
    %37 = math.tanh %31 : vector<8x128xf32>
    %38 = vector.extract_strided_slice %36 {offsets = [0, 0], sizes = [8, 32], strides = [1, 1]} : vector<8x128xf32> to vector<8x32xf32>
    %39 = vector.extract_strided_slice %36 {offsets = [0, 32], sizes = [8, 32], strides = [1, 1]} : vector<8x128xf32> to vector<8x32xf32>
    %40 = vector.extract_strided_slice %37 {offsets = [0, 64], sizes = [8, 32], strides = [1, 1]} : vector<8x128xf32> to vector<8x32xf32>
    %41 = vector.extract_strided_slice %36 {offsets = [0, 96], sizes = [8, 32], strides = [1, 1]} : vector<8x128xf32> to vector<8x32xf32>
    %42 = arith.mulf %39, %25 : vector<8x32xf32>
    %43 = arith.mulf %38, %40 : vector<8x32xf32>
    %44 = arith.addf %42, %43 : vector<8x32xf32>
    %45 = math.tanh %44 : vector<8x32xf32>
    %46 = arith.mulf %41, %45 : vector<8x32xf32>
    %c8_20 = arith.constant 8 : index
    %c0_21 = arith.constant 0 : index
    %47 = vector.load %arg8[%c8_20, %c0_21] : memref<64x32xf32, #tpu.memory_space<vmem>>, vector<8x32xf32>
    tpu.vector_store %arg8[%c8_20, %c0_21], %46 {strides = array<i32>} : memref<64x32xf32, #tpu.memory_space<vmem>>, vector<8x32xf32>,
    %c16 = arith.constant 16 : index
    %c0_22 = arith.constant 0 : index
    %48 = vector.load %arg9[%c16, %c0_22] : memref<64x128xf32, #tpu.memory_space<vmem>>, vector<8x128xf32>
    %cst_23 = arith.constant dense<0.000000e+00> : vector<8x128xf32>
    %49 = tpu.matmul %46, %7, %cst_23 {dimension_numbers = #tpu.dot_dimension_numbers<[1], [0], [0], [1], [0, 0, 1, 1], [], []>} : vector<8x32xf32>, vector<32x128xf32>, vector<8x128xf32> -> vector<8x128xf32>
    %50 = arith.addf %48, %49 : vector<8x128xf32>
    %51 = arith.negf %50 : vector<8x128xf32>
    %52 = math.exp %51 : vector<8x128xf32>
    %cst_24 = arith.constant 1.000000e+00 : f32
    %53 = vector.broadcast %cst_24 : f32 to vector<8x128xf32>
    %54 = arith.addf %53, %52 : vector<8x128xf32>
    %55 = arith.divf %53, %54 : vector<8x128xf32>
    %56 = math.tanh %50 : vector<8x128xf32>
    %57 = vector.extract_strided_slice %55 {offsets = [0, 0], sizes = [8, 32], strides = [1, 1]} : vector<8x128xf32> to vector<8x32xf32>
    %58 = vector.extract_strided_slice %55 {offsets = [0, 32], sizes = [8, 32], strides = [1, 1]} : vector<8x128xf32> to vector<8x32xf32>
    %59 = vector.extract_strided_slice %56 {offsets = [0, 64], sizes = [8, 32], strides = [1, 1]} : vector<8x128xf32> to vector<8x32xf32>
    %60 = vector.extract_strided_slice %55 {offsets = [0, 96], sizes = [8, 32], strides = [1, 1]} : vector<8x128xf32> to vector<8x32xf32>
    %61 = arith.mulf %58, %44 : vector<8x32xf32>
    %62 = arith.mulf %57, %59 : vector<8x32xf32>
    %63 = arith.addf %61, %62 : vector<8x32xf32>
    %64 = math.tanh %63 : vector<8x32xf32>
    %65 = arith.mulf %60, %64 : vector<8x32xf32>
    %c16_25 = arith.constant 16 : index
    %c0_26 = arith.constant 0 : index
    %66 = vector.load %arg8[%c16_25, %c0_26] : memref<64x32xf32, #tpu.memory_space<vmem>>, vector<8x32xf32>
    tpu.vector_store %arg8[%c16_25, %c0_26], %65 {strides = array<i32>} : memref<64x32xf32, #tpu.memory_space<vmem>>, vector<8x32xf32>,
    %c24 = arith.constant 24 : index
    %c0_27 = arith.constant 0 : index
    %67 = vector.load %arg9[%c24, %c0_27] : memref<64x128xf32, #tpu.memory_space<vmem>>, vector<8x128xf32>
    %cst_28 = arith.constant dense<0.000000e+00> : vector<8x128xf32>
    %68 = tpu.matmul %65, %7, %cst_28 {dimension_numbers = #tpu.dot_dimension_numbers<[1], [0], [0], [1], [0, 0, 1, 1], [], []>} : vector<8x32xf32>, vector<32x128xf32>, vector<8x128xf32> -> vector<8x128xf32>
    %69 = arith.addf %67, %68 : vector<8x128xf32>
    %70 = arith.negf %69 : vector<8x128xf32>
    %71 = math.exp %70 : vector<8x128xf32>
    %cst_29 = arith.constant 1.000000e+00 : f32
    %72 = vector.broadcast %cst_29 : f32 to vector<8x128xf32>
    %73 = arith.addf %72, %71 : vector<8x128xf32>
    %74 = arith.divf %72, %73 : vector<8x128xf32>
    %75 = math.tanh %69 : vector<8x128xf32>
    %76 = vector.extract_strided_slice %74 {offsets = [0, 0], sizes = [8, 32], strides = [1, 1]} : vector<8x128xf32> to vector<8x32xf32>
    %77 = vector.extract_strided_slice %74 {offsets = [0, 32], sizes = [8, 32], strides = [1, 1]} : vector<8x128xf32> to vector<8x32xf32>
    %78 = vector.extract_strided_slice %75 {offsets = [0, 64], sizes = [8, 32], strides = [1, 1]} : vector<8x128xf32> to vector<8x32xf32>
    %79 = vector.extract_strided_slice %74 {offsets = [0, 96], sizes = [8, 32], strides = [1, 1]} : vector<8x128xf32> to vector<8x32xf32>
    %80 = arith.mulf %77, %63 : vector<8x32xf32>
    %81 = arith.mulf %76, %78 : vector<8x32xf32>
    %82 = arith.addf %80, %81 : vector<8x32xf32>
    %83 = math.tanh %82 : vector<8x32xf32>
    %84 = arith.mulf %79, %83 : vector<8x32xf32>
    %c24_30 = arith.constant 24 : index
    %c0_31 = arith.constant 0 : index
    %85 = vector.load %arg8[%c24_30, %c0_31] : memref<64x32xf32, #tpu.memory_space<vmem>>, vector<8x32xf32>
    tpu.vector_store %arg8[%c24_30, %c0_31], %84 {strides = array<i32>} : memref<64x32xf32, #tpu.memory_space<vmem>>, vector<8x32xf32>,
    %c32 = arith.constant 32 : index
    %c0_32 = arith.constant 0 : index
    %86 = vector.load %arg9[%c32, %c0_32] : memref<64x128xf32, #tpu.memory_space<vmem>>, vector<8x128xf32>
    %cst_33 = arith.constant dense<0.000000e+00> : vector<8x128xf32>
    %87 = tpu.matmul %84, %7, %cst_33 {dimension_numbers = #tpu.dot_dimension_numbers<[1], [0], [0], [1], [0, 0, 1, 1], [], []>} : vector<8x32xf32>, vector<32x128xf32>, vector<8x128xf32> -> vector<8x128xf32>
    %88 = arith.addf %86, %87 : vector<8x128xf32>
    %89 = arith.negf %88 : vector<8x128xf32>
    %90 = math.exp %89 : vector<8x128xf32>
    %cst_34 = arith.constant 1.000000e+00 : f32
    %91 = vector.broadcast %cst_34 : f32 to vector<8x128xf32>
    %92 = arith.addf %91, %90 : vector<8x128xf32>
    %93 = arith.divf %91, %92 : vector<8x128xf32>
    %94 = math.tanh %88 : vector<8x128xf32>
    %95 = vector.extract_strided_slice %93 {offsets = [0, 0], sizes = [8, 32], strides = [1, 1]} : vector<8x128xf32> to vector<8x32xf32>
    %96 = vector.extract_strided_slice %93 {offsets = [0, 32], sizes = [8, 32], strides = [1, 1]} : vector<8x128xf32> to vector<8x32xf32>
    %97 = vector.extract_strided_slice %94 {offsets = [0, 64], sizes = [8, 32], strides = [1, 1]} : vector<8x128xf32> to vector<8x32xf32>
    %98 = vector.extract_strided_slice %93 {offsets = [0, 96], sizes = [8, 32], strides = [1, 1]} : vector<8x128xf32> to vector<8x32xf32>
    %99 = arith.mulf %96, %82 : vector<8x32xf32>
    %100 = arith.mulf %95, %97 : vector<8x32xf32>
    %101 = arith.addf %99, %100 : vector<8x32xf32>
    %102 = math.tanh %101 : vector<8x32xf32>
    %103 = arith.mulf %98, %102 : vector<8x32xf32>
    %c32_35 = arith.constant 32 : index
    %c0_36 = arith.constant 0 : index
    %104 = vector.load %arg8[%c32_35, %c0_36] : memref<64x32xf32, #tpu.memory_space<vmem>>, vector<8x32xf32>
    tpu.vector_store %arg8[%c32_35, %c0_36], %103 {strides = array<i32>} : memref<64x32xf32, #tpu.memory_space<vmem>>, vector<8x32xf32>,
    %c40 = arith.constant 40 : index
    %c0_37 = arith.constant 0 : index
    %105 = vector.load %arg9[%c40, %c0_37] : memref<64x128xf32, #tpu.memory_space<vmem>>, vector<8x128xf32>
    %cst_38 = arith.constant dense<0.000000e+00> : vector<8x128xf32>
    %106 = tpu.matmul %103, %7, %cst_38 {dimension_numbers = #tpu.dot_dimension_numbers<[1], [0], [0], [1], [0, 0, 1, 1], [], []>} : vector<8x32xf32>, vector<32x128xf32>, vector<8x128xf32> -> vector<8x128xf32>
    %107 = arith.addf %105, %106 : vector<8x128xf32>
    %108 = arith.negf %107 : vector<8x128xf32>
    %109 = math.exp %108 : vector<8x128xf32>
    %cst_39 = arith.constant 1.000000e+00 : f32
    %110 = vector.broadcast %cst_39 : f32 to vector<8x128xf32>
    %111 = arith.addf %110, %109 : vector<8x128xf32>
    %112 = arith.divf %110, %111 : vector<8x128xf32>
    %113 = math.tanh %107 : vector<8x128xf32>
    %114 = vector.extract_strided_slice %112 {offsets = [0, 0], sizes = [8, 32], strides = [1, 1]} : vector<8x128xf32> to vector<8x32xf32>
    %115 = vector.extract_strided_slice %112 {offsets = [0, 32], sizes = [8, 32], strides = [1, 1]} : vector<8x128xf32> to vector<8x32xf32>
    %116 = vector.extract_strided_slice %113 {offsets = [0, 64], sizes = [8, 32], strides = [1, 1]} : vector<8x128xf32> to vector<8x32xf32>
    %117 = vector.extract_strided_slice %112 {offsets = [0, 96], sizes = [8, 32], strides = [1, 1]} : vector<8x128xf32> to vector<8x32xf32>
    %118 = arith.mulf %115, %101 : vector<8x32xf32>
    %119 = arith.mulf %114, %116 : vector<8x32xf32>
    %120 = arith.addf %118, %119 : vector<8x32xf32>
    %121 = math.tanh %120 : vector<8x32xf32>
    %122 = arith.mulf %117, %121 : vector<8x32xf32>
    %c40_40 = arith.constant 40 : index
    %c0_41 = arith.constant 0 : index
    %123 = vector.load %arg8[%c40_40, %c0_41] : memref<64x32xf32, #tpu.memory_space<vmem>>, vector<8x32xf32>
    tpu.vector_store %arg8[%c40_40, %c0_41], %122 {strides = array<i32>} : memref<64x32xf32, #tpu.memory_space<vmem>>, vector<8x32xf32>,
    %c48 = arith.constant 48 : index
    %c0_42 = arith.constant 0 : index
    %124 = vector.load %arg9[%c48, %c0_42] : memref<64x128xf32, #tpu.memory_space<vmem>>, vector<8x128xf32>
    %cst_43 = arith.constant dense<0.000000e+00> : vector<8x128xf32>
    %125 = tpu.matmul %122, %7, %cst_43 {dimension_numbers = #tpu.dot_dimension_numbers<[1], [0], [0], [1], [0, 0, 1, 1], [], []>} : vector<8x32xf32>, vector<32x128xf32>, vector<8x128xf32> -> vector<8x128xf32>
    %126 = arith.addf %124, %125 : vector<8x128xf32>
    %127 = arith.negf %126 : vector<8x128xf32>
    %128 = math.exp %127 : vector<8x128xf32>
    %cst_44 = arith.constant 1.000000e+00 : f32
    %129 = vector.broadcast %cst_44 : f32 to vector<8x128xf32>
    %130 = arith.addf %129, %128 : vector<8x128xf32>
    %131 = arith.divf %129, %130 : vector<8x128xf32>
    %132 = math.tanh %126 : vector<8x128xf32>
    %133 = vector.extract_strided_slice %131 {offsets = [0, 0], sizes = [8, 32], strides = [1, 1]} : vector<8x128xf32> to vector<8x32xf32>
    %134 = vector.extract_strided_slice %131 {offsets = [0, 32], sizes = [8, 32], strides = [1, 1]} : vector<8x128xf32> to vector<8x32xf32>
    %135 = vector.extract_strided_slice %132 {offsets = [0, 64], sizes = [8, 32], strides = [1, 1]} : vector<8x128xf32> to vector<8x32xf32>
    %136 = vector.extract_strided_slice %131 {offsets = [0, 96], sizes = [8, 32], strides = [1, 1]} : vector<8x128xf32> to vector<8x32xf32>
    %137 = arith.mulf %134, %120 : vector<8x32xf32>
    %138 = arith.mulf %133, %135 : vector<8x32xf32>
    %139 = arith.addf %137, %138 : vector<8x32xf32>
    %140 = math.tanh %139 : vector<8x32xf32>
    %141 = arith.mulf %136, %140 : vector<8x32xf32>
    %c48_45 = arith.constant 48 : index
    %c0_46 = arith.constant 0 : index
    %142 = vector.load %arg8[%c48_45, %c0_46] : memref<64x32xf32, #tpu.memory_space<vmem>>, vector<8x32xf32>
    tpu.vector_store %arg8[%c48_45, %c0_46], %141 {strides = array<i32>} : memref<64x32xf32, #tpu.memory_space<vmem>>, vector<8x32xf32>,
    %c56 = arith.constant 56 : index
    %c0_47 = arith.constant 0 : index
    %143 = vector.load %arg9[%c56, %c0_47] : memref<64x128xf32, #tpu.memory_space<vmem>>, vector<8x128xf32>
    %cst_48 = arith.constant dense<0.000000e+00> : vector<8x128xf32>
    %144 = tpu.matmul %141, %7, %cst_48 {dimension_numbers = #tpu.dot_dimension_numbers<[1], [0], [0], [1], [0, 0, 1, 1], [], []>} : vector<8x32xf32>, vector<32x128xf32>, vector<8x128xf32> -> vector<8x128xf32>
    %145 = arith.addf %143, %144 : vector<8x128xf32>
    %146 = arith.negf %145 : vector<8x128xf32>
    %147 = math.exp %146 : vector<8x128xf32>
    %cst_49 = arith.constant 1.000000e+00 : f32
    %148 = vector.broadcast %cst_49 : f32 to vector<8x128xf32>
    %149 = arith.addf %148, %147 : vector<8x128xf32>
    %150 = arith.divf %148, %149 : vector<8x128xf32>
    %151 = math.tanh %145 : vector<8x128xf32>
    %152 = vector.extract_strided_slice %150 {offsets = [0, 0], sizes = [8, 32], strides = [1, 1]} : vector<8x128xf32> to vector<8x32xf32>
    %153 = vector.extract_strided_slice %150 {offsets = [0, 32], sizes = [8, 32], strides = [1, 1]} : vector<8x128xf32> to vector<8x32xf32>
    %154 = vector.extract_strided_slice %151 {offsets = [0, 64], sizes = [8, 32], strides = [1, 1]} : vector<8x128xf32> to vector<8x32xf32>
    %155 = vector.extract_strided_slice %150 {offsets = [0, 96], sizes = [8, 32], strides = [1, 1]} : vector<8x128xf32> to vector<8x32xf32>
    %156 = arith.mulf %153, %139 : vector<8x32xf32>
    %157 = arith.mulf %152, %154 : vector<8x32xf32>
    %158 = arith.addf %156, %157 : vector<8x32xf32>
    %159 = math.tanh %158 : vector<8x32xf32>
    %160 = arith.mulf %155, %159 : vector<8x32xf32>
    %c56_50 = arith.constant 56 : index
    %c0_51 = arith.constant 0 : index
    %161 = vector.load %arg8[%c56_50, %c0_51] : memref<64x32xf32, #tpu.memory_space<vmem>>, vector<8x32xf32>
    tpu.vector_store %arg8[%c56_50, %c0_51], %160 {strides = array<i32>} : memref<64x32xf32, #tpu.memory_space<vmem>>, vector<8x32xf32>,
    %c0_52 = arith.constant 0 : index
    %c0_53 = arith.constant 0 : index
    %162 = vector.load %arg8[%c0_52, %c0_53] : memref<64x32xf32, #tpu.memory_space<vmem>>, vector<64x32xf32>
    %c0_54 = arith.constant 0 : index
    %c0_55 = arith.constant 0 : index
    %163 = vector.load %arg4[%c0_54, %c0_55] : memref<32x128xf32, #tpu.memory_space<vmem>>, vector<32x128xf32>
    %cst_56 = arith.constant dense<0.000000e+00> : vector<64x128xf32>
    %164 = tpu.matmul %162, %163, %cst_56 {dimension_numbers = #tpu.dot_dimension_numbers<[1], [0], [0], [1], [0, 0, 1, 1], [], []>} : vector<64x32xf32>, vector<32x128xf32>, vector<64x128xf32> -> vector<64x128xf32>
    %c0_57 = arith.constant 0 : index
    %c0_58 = arith.constant 0 : index
    %165 = vector.load %arg6[%c0_57, %c0_58] : memref<1x128xf32, #tpu.memory_space<vmem>>, vector<1x128xf32>
    %166 = vector.broadcast %165 : vector<1x128xf32> to vector<64x128xf32>
    %167 = arith.addf %164, %166 : vector<64x128xf32>
    %c0_59 = arith.constant 0 : index
    %c0_60 = arith.constant 0 : index
    %168 = vector.load %arg9[%c0_59, %c0_60] : memref<64x128xf32, #tpu.memory_space<vmem>>, vector<64x128xf32>
    tpu.vector_store %arg9[%c0_59, %c0_60], %167 {strides = array<i32>} : memref<64x128xf32, #tpu.memory_space<vmem>>, vector<64x128xf32>,
    %c0_61 = arith.constant 0 : index
    %c0_62 = arith.constant 0 : index
    %169 = vector.load %arg5[%c0_61, %c0_62] : memref<32x128xf32, #tpu.memory_space<vmem>>, vector<32x128xf32>
    %cst_63 = arith.constant 0.000000e+00 : f32
    %170 = vector.broadcast %cst_63 : f32 to vector<8x32xf32>
    %cst_64 = arith.constant 0.000000e+00 : f32
    %171 = vector.broadcast %cst_64 : f32 to vector<8x32xf32>
    %c0_65 = arith.constant 0 : index
    %c0_66 = arith.constant 0 : index
    %172 = vector.load %arg9[%c0_65, %c0_66] : memref<64x128xf32, #tpu.memory_space<vmem>>, vector<8x128xf32>
    %cst_67 = arith.constant dense<0.000000e+00> : vector<8x128xf32>
    %173 = tpu.matmul %170, %169, %cst_67 {dimension_numbers = #tpu.dot_dimension_numbers<[1], [0], [0], [1], [0, 0, 1, 1], [], []>} : vector<8x32xf32>, vector<32x128xf32>, vector<8x128xf32> -> vector<8x128xf32>
    %174 = arith.addf %172, %173 : vector<8x128xf32>
    %175 = arith.negf %174 : vector<8x128xf32>
    %176 = math.exp %175 : vector<8x128xf32>
    %cst_68 = arith.constant 1.000000e+00 : f32
    %177 = vector.broadcast %cst_68 : f32 to vector<8x128xf32>
    %178 = arith.addf %177, %176 : vector<8x128xf32>
    %179 = arith.divf %177, %178 : vector<8x128xf32>
    %180 = math.tanh %174 : vector<8x128xf32>
    %181 = vector.extract_strided_slice %179 {offsets = [0, 0], sizes = [8, 32], strides = [1, 1]} : vector<8x128xf32> to vector<8x32xf32>
    %182 = vector.extract_strided_slice %179 {offsets = [0, 32], sizes = [8, 32], strides = [1, 1]} : vector<8x128xf32> to vector<8x32xf32>
    %183 = vector.extract_strided_slice %180 {offsets = [0, 64], sizes = [8, 32], strides = [1, 1]} : vector<8x128xf32> to vector<8x32xf32>
    %184 = vector.extract_strided_slice %179 {offsets = [0, 96], sizes = [8, 32], strides = [1, 1]} : vector<8x128xf32> to vector<8x32xf32>
    %185 = arith.mulf %182, %171 : vector<8x32xf32>
    %186 = arith.mulf %181, %183 : vector<8x32xf32>
    %187 = arith.addf %185, %186 : vector<8x32xf32>
    %188 = math.tanh %187 : vector<8x32xf32>
    %189 = arith.mulf %184, %188 : vector<8x32xf32>
    %c8_69 = arith.constant 8 : index
    %c0_70 = arith.constant 0 : index
    %190 = vector.load %arg9[%c8_69, %c0_70] : memref<64x128xf32, #tpu.memory_space<vmem>>, vector<8x128xf32>
    %cst_71 = arith.constant dense<0.000000e+00> : vector<8x128xf32>
    %191 = tpu.matmul %189, %169, %cst_71 {dimension_numbers = #tpu.dot_dimension_numbers<[1], [0], [0], [1], [0, 0, 1, 1], [], []>} : vector<8x32xf32>, vector<32x128xf32>, vector<8x128xf32> -> vector<8x128xf32>
    %192 = arith.addf %190, %191 : vector<8x128xf32>
    %193 = arith.negf %192 : vector<8x128xf32>
    %194 = math.exp %193 : vector<8x128xf32>
    %cst_72 = arith.constant 1.000000e+00 : f32
    %195 = vector.broadcast %cst_72 : f32 to vector<8x128xf32>
    %196 = arith.addf %195, %194 : vector<8x128xf32>
    %197 = arith.divf %195, %196 : vector<8x128xf32>
    %198 = math.tanh %192 : vector<8x128xf32>
    %199 = vector.extract_strided_slice %197 {offsets = [0, 0], sizes = [8, 32], strides = [1, 1]} : vector<8x128xf32> to vector<8x32xf32>
    %200 = vector.extract_strided_slice %197 {offsets = [0, 32], sizes = [8, 32], strides = [1, 1]} : vector<8x128xf32> to vector<8x32xf32>
    %201 = vector.extract_strided_slice %198 {offsets = [0, 64], sizes = [8, 32], strides = [1, 1]} : vector<8x128xf32> to vector<8x32xf32>
    %202 = vector.extract_strided_slice %197 {offsets = [0, 96], sizes = [8, 32], strides = [1, 1]} : vector<8x128xf32> to vector<8x32xf32>
    %203 = arith.mulf %200, %187 : vector<8x32xf32>
    %204 = arith.mulf %199, %201 : vector<8x32xf32>
    %205 = arith.addf %203, %204 : vector<8x32xf32>
    %206 = math.tanh %205 : vector<8x32xf32>
    %207 = arith.mulf %202, %206 : vector<8x32xf32>
    %c16_73 = arith.constant 16 : index
    %c0_74 = arith.constant 0 : index
    %208 = vector.load %arg9[%c16_73, %c0_74] : memref<64x128xf32, #tpu.memory_space<vmem>>, vector<8x128xf32>
    %cst_75 = arith.constant dense<0.000000e+00> : vector<8x128xf32>
    %209 = tpu.matmul %207, %169, %cst_75 {dimension_numbers = #tpu.dot_dimension_numbers<[1], [0], [0], [1], [0, 0, 1, 1], [], []>} : vector<8x32xf32>, vector<32x128xf32>, vector<8x128xf32> -> vector<8x128xf32>
    %210 = arith.addf %208, %209 : vector<8x128xf32>
    %211 = arith.negf %210 : vector<8x128xf32>
    %212 = math.exp %211 : vector<8x128xf32>
    %cst_76 = arith.constant 1.000000e+00 : f32
    %213 = vector.broadcast %cst_76 : f32 to vector<8x128xf32>
    %214 = arith.addf %213, %212 : vector<8x128xf32>
    %215 = arith.divf %213, %214 : vector<8x128xf32>
    %216 = math.tanh %210 : vector<8x128xf32>
    %217 = vector.extract_strided_slice %215 {offsets = [0, 0], sizes = [8, 32], strides = [1, 1]} : vector<8x128xf32> to vector<8x32xf32>
    %218 = vector.extract_strided_slice %215 {offsets = [0, 32], sizes = [8, 32], strides = [1, 1]} : vector<8x128xf32> to vector<8x32xf32>
    %219 = vector.extract_strided_slice %216 {offsets = [0, 64], sizes = [8, 32], strides = [1, 1]} : vector<8x128xf32> to vector<8x32xf32>
    %220 = vector.extract_strided_slice %215 {offsets = [0, 96], sizes = [8, 32], strides = [1, 1]} : vector<8x128xf32> to vector<8x32xf32>
    %221 = arith.mulf %218, %205 : vector<8x32xf32>
    %222 = arith.mulf %217, %219 : vector<8x32xf32>
    %223 = arith.addf %221, %222 : vector<8x32xf32>
    %224 = math.tanh %223 : vector<8x32xf32>
    %225 = arith.mulf %220, %224 : vector<8x32xf32>
    %c24_77 = arith.constant 24 : index
    %c0_78 = arith.constant 0 : index
    %226 = vector.load %arg9[%c24_77, %c0_78] : memref<64x128xf32, #tpu.memory_space<vmem>>, vector<8x128xf32>
    %cst_79 = arith.constant dense<0.000000e+00> : vector<8x128xf32>
    %227 = tpu.matmul %225, %169, %cst_79 {dimension_numbers = #tpu.dot_dimension_numbers<[1], [0], [0], [1], [0, 0, 1, 1], [], []>} : vector<8x32xf32>, vector<32x128xf32>, vector<8x128xf32> -> vector<8x128xf32>
    %228 = arith.addf %226, %227 : vector<8x128xf32>
    %229 = arith.negf %228 : vector<8x128xf32>
    %230 = math.exp %229 : vector<8x128xf32>
    %cst_80 = arith.constant 1.000000e+00 : f32
    %231 = vector.broadcast %cst_80 : f32 to vector<8x128xf32>
    %232 = arith.addf %231, %230 : vector<8x128xf32>
    %233 = arith.divf %231, %232 : vector<8x128xf32>
    %234 = math.tanh %228 : vector<8x128xf32>
    %235 = vector.extract_strided_slice %233 {offsets = [0, 0], sizes = [8, 32], strides = [1, 1]} : vector<8x128xf32> to vector<8x32xf32>
    %236 = vector.extract_strided_slice %233 {offsets = [0, 32], sizes = [8, 32], strides = [1, 1]} : vector<8x128xf32> to vector<8x32xf32>
    %237 = vector.extract_strided_slice %234 {offsets = [0, 64], sizes = [8, 32], strides = [1, 1]} : vector<8x128xf32> to vector<8x32xf32>
    %238 = vector.extract_strided_slice %233 {offsets = [0, 96], sizes = [8, 32], strides = [1, 1]} : vector<8x128xf32> to vector<8x32xf32>
    %239 = arith.mulf %236, %223 : vector<8x32xf32>
    %240 = arith.mulf %235, %237 : vector<8x32xf32>
    %241 = arith.addf %239, %240 : vector<8x32xf32>
    %242 = math.tanh %241 : vector<8x32xf32>
    %243 = arith.mulf %238, %242 : vector<8x32xf32>
    %c32_81 = arith.constant 32 : index
    %c0_82 = arith.constant 0 : index
    %244 = vector.load %arg9[%c32_81, %c0_82] : memref<64x128xf32, #tpu.memory_space<vmem>>, vector<8x128xf32>
    %cst_83 = arith.constant dense<0.000000e+00> : vector<8x128xf32>
    %245 = tpu.matmul %243, %169, %cst_83 {dimension_numbers = #tpu.dot_dimension_numbers<[1], [0], [0], [1], [0, 0, 1, 1], [], []>} : vector<8x32xf32>, vector<32x128xf32>, vector<8x128xf32> -> vector<8x128xf32>
    %246 = arith.addf %244, %245 : vector<8x128xf32>
    %247 = arith.negf %246 : vector<8x128xf32>
    %248 = math.exp %247 : vector<8x128xf32>
    %cst_84 = arith.constant 1.000000e+00 : f32
    %249 = vector.broadcast %cst_84 : f32 to vector<8x128xf32>
    %250 = arith.addf %249, %248 : vector<8x128xf32>
    %251 = arith.divf %249, %250 : vector<8x128xf32>
    %252 = math.tanh %246 : vector<8x128xf32>
    %253 = vector.extract_strided_slice %251 {offsets = [0, 0], sizes = [8, 32], strides = [1, 1]} : vector<8x128xf32> to vector<8x32xf32>
    %254 = vector.extract_strided_slice %251 {offsets = [0, 32], sizes = [8, 32], strides = [1, 1]} : vector<8x128xf32> to vector<8x32xf32>
    %255 = vector.extract_strided_slice %252 {offsets = [0, 64], sizes = [8, 32], strides = [1, 1]} : vector<8x128xf32> to vector<8x32xf32>
    %256 = vector.extract_strided_slice %251 {offsets = [0, 96], sizes = [8, 32], strides = [1, 1]} : vector<8x128xf32> to vector<8x32xf32>
    %257 = arith.mulf %254, %241 : vector<8x32xf32>
    %258 = arith.mulf %253, %255 : vector<8x32xf32>
    %259 = arith.addf %257, %258 : vector<8x32xf32>
    %260 = math.tanh %259 : vector<8x32xf32>
    %261 = arith.mulf %256, %260 : vector<8x32xf32>
    %c40_85 = arith.constant 40 : index
    %c0_86 = arith.constant 0 : index
    %262 = vector.load %arg9[%c40_85, %c0_86] : memref<64x128xf32, #tpu.memory_space<vmem>>, vector<8x128xf32>
    %cst_87 = arith.constant dense<0.000000e+00> : vector<8x128xf32>
    %263 = tpu.matmul %261, %169, %cst_87 {dimension_numbers = #tpu.dot_dimension_numbers<[1], [0], [0], [1], [0, 0, 1, 1], [], []>} : vector<8x32xf32>, vector<32x128xf32>, vector<8x128xf32> -> vector<8x128xf32>
    %264 = arith.addf %262, %263 : vector<8x128xf32>
    %265 = arith.negf %264 : vector<8x128xf32>
    %266 = math.exp %265 : vector<8x128xf32>
    %cst_88 = arith.constant 1.000000e+00 : f32
    %267 = vector.broadcast %cst_88 : f32 to vector<8x128xf32>
    %268 = arith.addf %267, %266 : vector<8x128xf32>
    %269 = arith.divf %267, %268 : vector<8x128xf32>
    %270 = math.tanh %264 : vector<8x128xf32>
    %271 = vector.extract_strided_slice %269 {offsets = [0, 0], sizes = [8, 32], strides = [1, 1]} : vector<8x128xf32> to vector<8x32xf32>
    %272 = vector.extract_strided_slice %269 {offsets = [0, 32], sizes = [8, 32], strides = [1, 1]} : vector<8x128xf32> to vector<8x32xf32>
    %273 = vector.extract_strided_slice %270 {offsets = [0, 64], sizes = [8, 32], strides = [1, 1]} : vector<8x128xf32> to vector<8x32xf32>
    %274 = vector.extract_strided_slice %269 {offsets = [0, 96], sizes = [8, 32], strides = [1, 1]} : vector<8x128xf32> to vector<8x32xf32>
    %275 = arith.mulf %272, %259 : vector<8x32xf32>
    %276 = arith.mulf %271, %273 : vector<8x32xf32>
    %277 = arith.addf %275, %276 : vector<8x32xf32>
    %278 = math.tanh %277 : vector<8x32xf32>
    %279 = arith.mulf %274, %278 : vector<8x32xf32>
    %c48_89 = arith.constant 48 : index
    %c0_90 = arith.constant 0 : index
    %280 = vector.load %arg9[%c48_89, %c0_90] : memref<64x128xf32, #tpu.memory_space<vmem>>, vector<8x128xf32>
    %cst_91 = arith.constant dense<0.000000e+00> : vector<8x128xf32>
    %281 = tpu.matmul %279, %169, %cst_91 {dimension_numbers = #tpu.dot_dimension_numbers<[1], [0], [0], [1], [0, 0, 1, 1], [], []>} : vector<8x32xf32>, vector<32x128xf32>, vector<8x128xf32> -> vector<8x128xf32>
    %282 = arith.addf %280, %281 : vector<8x128xf32>
    %283 = arith.negf %282 : vector<8x128xf32>
    %284 = math.exp %283 : vector<8x128xf32>
    %cst_92 = arith.constant 1.000000e+00 : f32
    %285 = vector.broadcast %cst_92 : f32 to vector<8x128xf32>
    %286 = arith.addf %285, %284 : vector<8x128xf32>
    %287 = arith.divf %285, %286 : vector<8x128xf32>
    %288 = math.tanh %282 : vector<8x128xf32>
    %289 = vector.extract_strided_slice %287 {offsets = [0, 0], sizes = [8, 32], strides = [1, 1]} : vector<8x128xf32> to vector<8x32xf32>
    %290 = vector.extract_strided_slice %287 {offsets = [0, 32], sizes = [8, 32], strides = [1, 1]} : vector<8x128xf32> to vector<8x32xf32>
    %291 = vector.extract_strided_slice %288 {offsets = [0, 64], sizes = [8, 32], strides = [1, 1]} : vector<8x128xf32> to vector<8x32xf32>
    %292 = vector.extract_strided_slice %287 {offsets = [0, 96], sizes = [8, 32], strides = [1, 1]} : vector<8x128xf32> to vector<8x32xf32>
    %293 = arith.mulf %290, %277 : vector<8x32xf32>
    %294 = arith.mulf %289, %291 : vector<8x32xf32>
    %295 = arith.addf %293, %294 : vector<8x32xf32>
    %296 = math.tanh %295 : vector<8x32xf32>
    %297 = arith.mulf %292, %296 : vector<8x32xf32>
    %c56_93 = arith.constant 56 : index
    %c0_94 = arith.constant 0 : index
    %298 = vector.load %arg9[%c56_93, %c0_94] : memref<64x128xf32, #tpu.memory_space<vmem>>, vector<8x128xf32>
    %cst_95 = arith.constant dense<0.000000e+00> : vector<8x128xf32>
    %299 = tpu.matmul %297, %169, %cst_95 {dimension_numbers = #tpu.dot_dimension_numbers<[1], [0], [0], [1], [0, 0, 1, 1], [], []>} : vector<8x32xf32>, vector<32x128xf32>, vector<8x128xf32> -> vector<8x128xf32>
    %300 = arith.addf %298, %299 : vector<8x128xf32>
    %301 = arith.negf %300 : vector<8x128xf32>
    %302 = math.exp %301 : vector<8x128xf32>
    %cst_96 = arith.constant 1.000000e+00 : f32
    %303 = vector.broadcast %cst_96 : f32 to vector<8x128xf32>
    %304 = arith.addf %303, %302 : vector<8x128xf32>
    %305 = arith.divf %303, %304 : vector<8x128xf32>
    %306 = math.tanh %300 : vector<8x128xf32>
    %307 = vector.extract_strided_slice %305 {offsets = [0, 0], sizes = [8, 32], strides = [1, 1]} : vector<8x128xf32> to vector<8x32xf32>
    %308 = vector.extract_strided_slice %305 {offsets = [0, 32], sizes = [8, 32], strides = [1, 1]} : vector<8x128xf32> to vector<8x32xf32>
    %309 = vector.extract_strided_slice %306 {offsets = [0, 64], sizes = [8, 32], strides = [1, 1]} : vector<8x128xf32> to vector<8x32xf32>
    %310 = vector.extract_strided_slice %305 {offsets = [0, 96], sizes = [8, 32], strides = [1, 1]} : vector<8x128xf32> to vector<8x32xf32>
    %311 = arith.mulf %308, %295 : vector<8x32xf32>
    %312 = arith.mulf %307, %309 : vector<8x32xf32>
    %313 = arith.addf %311, %312 : vector<8x32xf32>
    %314 = math.tanh %313 : vector<8x32xf32>
    %315 = arith.mulf %310, %314 : vector<8x32xf32>
    %c0_97 = arith.constant 0 : index
    %c0_98 = arith.constant 0 : index
    %316 = vector.load %arg7[%c0_97, %c0_98] : memref<8x32xf32, #tpu.memory_space<vmem>>, vector<8x32xf32>
    tpu.vector_store %arg7[%c0_97, %c0_98], %315 {strides = array<i32>} : memref<8x32xf32, #tpu.memory_space<vmem>>, vector<8x32xf32>,
    return
  }
}

</mosaic_0001>

<bundles_post_ra>
// kernel: tpu_custom_call.1
= control target key start
LH: loop header
LB: loop body
LE: loop exit
PB: predicated region body
PF: predicated region fallthrough
CT: control target
= control target key end

     0   :  { %12 = vsyncpa [#allocation5], 0  ;;  %s3052_s0 = inlined_call_operand.vmem [shape: f32[64,8], index: 0, kind: input, shape index: {}]   ;;  %s3053_s1 = inlined_call_operand.vmem [shape: f32[8,128], index: 1, kind: input, shape index: {}]   ;;  %s3054_s2 = inlined_call_operand.vmem [shape: f32[32,128], index: 2, kind: input, shape index: {}]   ;;  %s3055_s3 = inlined_call_operand.vmem [shape: f32[1,128], index: 3, kind: input, shape index: {}]   ;;  %s3056_s4 = inlined_call_operand.vmem [shape: f32[32,128], index: 4, kind: input, shape index: {}]   ;;  %s3057_s5 = inlined_call_operand.hbm [shape: f32[32,128], index: 5, kind: input, shape index: {}]   ;;  %s3058_s6 = inlined_call_operand.vmem [shape: f32[1,128], index: 6, kind: input, shape index: {}]   ;;  %s3059_s7 = inlined_call_operand.hbm [shape: f32[8,32], index: 7, kind: output, shape index: {}]  }
   0x1   :  { %13 = vsyncpa [#allocation6], 0  ;;  %s2656_s24 = smov [#allocation4]   ;;  %s2608_s28 = scalar_lea.hbm %s3057_s5, 512 }
   0x2   :  { %s29_s25 = sshll.u32 %s2656_s24, 4  ;;  %p2609_p0 = scmp.ne.s32.totalorder %s3057_s5, %s2608_s28  ;;  %s30_s25 = int_to_ptr.vmem [resolvable:$true] %s29_s25 }
   0x3   :  { %p2612_p1 = scmp.lt.u32.totalorder %s2608_s28, %s3057_s5 }
   0x5   :  { %p2614_p2 = pnand %p2612_p1, %p2609_p0 }
   0x7   :  { %2617 = shalt.err (!%p2614_p2)
}
   0x8   :  { %s2618_s10 = scalar_lea.vmem %s30_s25, 512  ;;  %p2623_p4 = scmp.lt.s32.totalorder %s30_s25, %s30_s25 }
   0x9   :  { %p2619_p3 = scmp.ne.s32.totalorder %s30_s25, %s2618_s10  ;;  %p2624_p5 = scmp.lt.s32.totalorder %s2618_s10, %s2618_s10 }
   0xb   :  { %p2625_p6 = por %p2624_p5, %p2623_p4 }
   0xd   :  { %p2626_p7 = pnand %p2625_p6, %p2619_p3 }
   0xf   :  { %2629 = shalt.err (!%p2626_p7)
}
  0x10   :  { %s2657_s11 = smov 128   ;;  %s2658_s12 = smov 8  }
  0x11   :  { %35 = dma.hbm_to_vmem [thread:$0]  %s3057_s5, 512, %s30_s25, [#allocation5], %s2657_s11, %s2657_s11, %s2658_s12  }
  0x12   :  { %2652 = dma.done.wait [#allocation5], 512  }
  0x13   :  { %2653 = vsyncadd [#allocation5], 4294966784  ;;  %v2659_v0 = vmov 0.0|0.0   ;;  %vm2660_vm0 = vmmov 0   ;;  %v2661_v1 = vmov 0.0   ;;  %vm57_vm1 = vcmask 64512  }
  0x14   :  { %2367 = vmatprep.subr.bf16.mxu1 %v2659_v0  ;;  %2179 = vmatprep.mubr.msk.f32.mxu1 %vm2660_vm0, %v2661_v1  ;;  %v195_v2 = vld [vmem:[%s3054_s2] sm:$0xff]  ;;  %v196_v3 = vld [vmem:[%s3054_s2 + $0x8] sm:$0xff]  ;;  %v197_v8 = vld [vmem:[%s3054_s2 + $0x10] sm:$0xff]  ;;  %s2662_s28 = smov 64   ;;  %vm200_vm2 = vcmask 261120  }
  0x15   :  { %v49_v4 = vld [vmem:[%s3053_s1] sm:$0xff]  ;;  %v2729_v5 = vpack.c.bf16 %v196_v3, %v195_v2  ;;  %v42_v7 = vld [vmem:[%s3052_s0 + $0x8] sm:$0xff]  ;;  %v198_v9 = vld [vmem:[%s3054_s2 + $0x18] sm:$0xff] }
  0x16   :  { %2157 = vmatprep.subr.mxu0 %v49_v4  ;;  %v41_v6 = vld [vmem:[%s3052_s0] sm:$0xff]  ;;  %v2746_v10 = vpack.c.bf16 %v198_v9, %v197_v8  ;;  %v43_v46 = vld [vmem:[%s3052_s0 + $0x10] sm:$0xff]  ;;  %v44_v47 = vld [vmem:[%s3052_s0 + $0x18] sm:$0xff] }
  0x17   :  { %2158 = vmatpush3.msra.mxu0 %v49_v4  ;;  %2159 = vmatprep.mubr.msk.f32.mxu0 %vm57_vm1, %v41_v6  ;;  %v2766_v12 = vld [vmem:[%s3055_s3] ss:$0 sm:$0xff]  ;;  %s2663_s3 = smov 32   ;;  %v46_v49 = vld [vmem:[%s3052_s0 + $0x28] sm:$0xff]  ;;  %v47_v50 = vld [vmem:[%s3052_s0 + $0x30] sm:$0xff] }
  0x18   :  { %2369 = vmatpush3.bf16.msra.mxu1 %v2729_v5  ;;  %2160 = vmatmul.mubr.msk.f32.vlgmr.msra.gmra.mrb[0].mxu0 %vm57_vm1, %v42_v7  ;;  %v45_v48 = vld [vmem:[%s3052_s0 + $0x20] sm:$0xff]  ;;  %v48_v51 = vld [vmem:[%s3052_s0 + $0x38] sm:$0xff] }
  0x19   :  { %2370 = vmatprep.subr.bf16.mxu1 %v2659_v0  ;;  %2379 = vmatprep.subr.bf16.mxu0 %v2659_v0 }
  0x1a   :  { %2381 = vmatpush3.bf16.msra.mxu0 %v2729_v5  ;;  %2162 = vmatprep.mubr.msk.f32.mxu0 %vm57_vm1, %v43_v46 }
  0x1b   :  { %2382 = vmatprep.subr.bf16.mxu0 %v2659_v0 }
  0x1c   :  { %2372 = vmatpush3.bf16.msra.mxu1 %v2746_v10  ;;  %2163 = vmatmul.mubr.msk.f32.gmra.mrb[2].mxu0 %vm57_vm1, %v44_v47 }
  0x1d   :  { %2373 = vmatprep.subr.bf16.mxu1 %v2659_v0  ;;  %2165 = vmatprep.mubr.msk.f32.mxu0 %vm57_vm1, %v45_v48 }
  0x1e   :  { %2384 = vmatpush3.bf16.msra.mxu0 %v2746_v10 }
  0x1f   :  { %2180 = vmatmul.mubr.f32.vlgmr.msra.gmra.mrb[0].mxu1 %v2661_v1  ;;  %2391 = vmatprep.subr.bf16.mxu0 %v2659_v0 }
  0x20   :  { %2375 = vmatpush3.bf16.msra.mxu1 %v2729_v5  ;;  %2190 = vmatprep.mubr.msk.f32.mxu1 %vm2660_vm0, %v2661_v1 }
  0x21   :  { %2376 = vmatprep.subr.bf16.mxu1 %v2659_v0  ;;  %2166 = vmatmul.mubr.msk.f32.gmra.mrb[4].mxu0 %vm57_vm1, %v46_v49 }
  0x22   :  { %2168 = vmatprep.mubr.msk.f32.mxu0 %vm57_vm1, %v47_v50 }
  0x24   :  { %2378 = vmatpush3.bf16.msra.mxu1 %v2746_v10 }
  0x25   :  { %2385 = vmatprep.subr.bf16.mxu1 %v2659_v0  ;;  %2169 = vmatmul.mubr.msk.f32.gmra.mrb[6].mxu0 %vm57_vm1, %v48_v51 }
  0x26   :  { %2201 = vmatprep.mubr.msk.f32.mxu0 %vm2660_vm0, %v2661_v1 }
  0xeb   :  { %v2161_v11 = vpop.f32.mrb[0].mxu0 }
  0xec   :  { %v148_v13 = vpop.f32.mrb[1].mxu0  ;;  %v154_v32 = vadd.f32 %v2161_v11, %v2766_v12 }
  0xed   :  { %v149_v14 = vadd.f32 %v2766_v12, %v148_v13 }
  0xef   :  { %v2164_v55 = vpop.f32.mrb[2].mxu0 }
  0xf0   :  { %v158_v56 = vpop.f32.mrb[3].mxu0 }
  0xf1   :  { %v159_v62 = vadd.f32 %v2766_v12, %v158_v56 }
  0xf2   :  { %v270_v15 = vpop.f32.mrb[0].mxu1 }
  0xf3   :  { %v274_v16 = vadd.f32 %v270_v15, %v149_v14  ;;  %v2181_v17 = vpop.f32.mrb[1].mxu1 }
  0xf4   :  { %v2812_v57 = vpop.f32.mrb[4].mxu0 }
  0xf5   :  { %2480 = vtanh.f32 %v274_v16  ;;  %v2017_v19 = vmul.f32 -1.442695, %v274_v16  ;;  %v2814_v58 = vpop.f32.mrb[5].mxu0 }
  0xf7   :  { %2482 = vpow2.f32 %v2017_v19 }
  0xf8   :  { %v2816_v59 = vpop.f32.mrb[6].mxu0 }
  0xf9   :  { %v2818_v60 = vpop.f32.mrb[7].mxu0 }
  0xff   :  { %v2481_v18 = vpop.eup %2480 }
 0x100   :  { %284 = vrot.lane.b32.xlu0 %v2481_v18, %s2662_s28 }
 0x101   :  { %v2483_v20 = vpop.eup %2482 }
 0x102   :  { %v278_v21 = vadd.f32 1.0, %v2483_v20 }
 0x104   :  { %2484 = vrcp.f32 %v278_v21  ;;  %v164_v21 = vadd.f32 %v2164_v55, %v2766_v12 }
 0x10e   :  { %v2485_v22 = vpop.eup %2484 }
 0x10f   :  { %v282_v25 = vmul.f32 0.0, %v2485_v22 }
 0x172   :  { %v285_v23 = vpop.permute.xlu0 %284 }
 0x173   :  { %v287_v24 = vmul.f32 %v2485_v22, %v285_v23 }
 0x175   :  { %289 = vrot.lane.b32.xlu0 %v287_v24, %s2663_s3 }
 0x1e7   :  { %v290_v26 = vpop.permute.xlu0 %289 }
 0x1e8   :  { %v292_v27 = vadd.f32 %v290_v26, %v282_v25 }
 0x1ea   :  { %2486 = vtanh.f32 %v292_v27 }
 0x1f4   :  { %v2487_v28 = vpop.eup %2486 }
 0x1f5   :  { %295 = vrot.lane.b32.xlu1 %v2487_v28, %s2662_s28 }
 0x267   :  { %v296_v29 = vpop.permute.xlu1 %295 }
 0x268   :  { %v298_v30 = vmul.f32 %v2485_v22, %v296_v29 }
 0x26a   :  { %300 = vrot.lane.b32.xlu1 %v298_v30, %s2663_s3 }
 0x2dc   :  { %v301_v31 = vpop.permute.xlu1 %300 }
 0x2dd   :  { %303 = vst.msk [vmem:[#allocation2] sm:$0xff] %vm200_vm2, %v301_v31  ;;  %2191 = vmatmul.mubr.msk.f32.vlgmr.msra.gmra.mrb[2].mxu1 %vm200_vm2, %v301_v31 }
 0x2de   :  { %2387 = vmatpush3.bf16.msra.mxu1 %v2729_v5  ;;  %2212 = vmatprep.mubr.msk.f32.mxu1 %vm2660_vm0, %v2661_v1 }
 0x2df   :  { %2388 = vmatprep.subr.bf16.mxu1 %v2659_v0 }
 0x2e2   :  { %2390 = vmatpush3.bf16.msra.mxu1 %v2746_v10 }
 0x2e3   :  { %2397 = vmatprep.subr.bf16.mxu1 %v2659_v0 }
 0x3b0   :  { %v373_v33 = vpop.f32.mrb[2].mxu1 }
 0x3b1   :  { %v377_v34 = vadd.f32 %v373_v33, %v154_v32  ;;  %v2192_v35 = vpop.f32.mrb[3].mxu1 }
 0x3b3   :  { %2488 = vtanh.f32 %v377_v34  ;;  %v2019_v37 = vmul.f32 -1.442695, %v377_v34 }
 0x3b5   :  { %2490 = vpow2.f32 %v2019_v37 }
 0x3bd   :  { %v2489_v36 = vpop.eup %2488 }
 0x3be   :  { %387 = vrot.lane.b32.xlu0 %v2489_v36, %s2662_s28 }
 0x3bf   :  { %v2491_v38 = vpop.eup %2490 }
 0x3c0   :  { %v381_v39 = vadd.f32 1.0, %v2491_v38 }
 0x3c2   :  { %2492 = vrcp.f32 %v381_v39  ;;  %v169_v39 = vadd.f32 %v2766_v12, %v2814_v58  ;;  %v174_v58 = vadd.f32 %v2812_v57, %v2766_v12 }
 0x3cc   :  { %v2493_v40 = vpop.eup %2492 }
 0x3cd   :  { %v385_v43 = vmul.f32 %v2493_v40, %v292_v27 }
 0x430   :  { %v388_v41 = vpop.permute.xlu0 %387 }
 0x431   :  { %v390_v42 = vmul.f32 %v2493_v40, %v388_v41 }
 0x433   :  { %392 = vrot.lane.b32.xlu1 %v390_v42, %s2663_s3 }
 0x4a5   :  { %v393_v44 = vpop.permute.xlu1 %392 }
 0x4a6   :  { %v395_v45 = vadd.f32 %v393_v44, %v385_v43 }
 0x4a8   :  { %2494 = vtanh.f32 %v395_v45 }
 0x4b2   :  { %v2495_v52 = vpop.eup %2494 }
 0x4b3   :  { %398 = vrot.lane.b32.xlu0 %v2495_v52, %s2662_s28 }
 0x525   :  { %v399_v53 = vpop.permute.xlu0 %398 }
 0x526   :  { %v401_v54 = vmul.f32 %v2493_v40, %v399_v53 }
 0x528   :  { %403 = vrot.lane.b32.xlu1 %v401_v54, %s2663_s3 }
 0x59a   :  { %v404_v61 = vpop.permute.xlu1 %403 }
 0x59b   :  { %406 = vst.msk [vmem:[#allocation2 + $0x8] sm:$0xff] %vm200_vm2, %v404_v61  ;;  %2202 = vmatmul.mubr.msk.f32.vlgmr.msra.gmra.mrb[8].mxu0 %vm200_vm2, %v404_v61 }
 0x59c   :  { %2393 = vmatpush3.bf16.msra.mxu0 %v2729_v5  ;;  %2223 = vmatprep.mubr.msk.f32.mxu0 %vm2660_vm0, %v2661_v1 }
 0x59d   :  { %2394 = vmatprep.subr.bf16.mxu0 %v2659_v0 }
 0x5a0   :  { %2396 = vmatpush3.bf16.msra.mxu0 %v2746_v10 }
 0x5a1   :  { %2403 = vmatprep.subr.bf16.mxu0 %v2659_v0 }
 0x66e   :  { %v476_v63 = vpop.f32.mrb[8].mxu0 }
 0x66f   :  { %v480_v2 = vadd.f32 %v476_v63, %v159_v62  ;;  %v2203_v3 = vpop.f32.mrb[9].mxu0 }
 0x671   :  { %2496 = vtanh.f32 %v480_v2  ;;  %v2021_v6 = vmul.f32 -1.442695, %v480_v2 }
 0x673   :  { %2498 = vpow2.f32 %v2021_v6 }
 0x67b   :  { %v2497_v4 = vpop.eup %2496 }
 0x67c   :  { %490 = vrot.lane.b32.xlu0 %v2497_v4, %s2662_s28 }
 0x67d   :  { %v2499_v7 = vpop.eup %2498 }
 0x67e   :  { %v484_v8 = vadd.f32 1.0, %v2499_v7 }
 0x680   :  { %2500 = vrcp.f32 %v484_v8 }
 0x68a   :  { %v2501_v9 = vpop.eup %2500 }
 0x68b   :  { %v488_v14 = vmul.f32 %v2501_v9, %v395_v45 }
 0x6ee   :  { %v491_v11 = vpop.permute.xlu0 %490 }
 0x6ef   :  { %v493_v13 = vmul.f32 %v2501_v9, %v491_v11  ;;  %v1033_v11 = vld [vmem:[%s3056_s4] sm:$0xff] }
 0x6f1   :  { %495 = vrot.lane.b32.xlu1 %v493_v13, %s2663_s3  ;;  %v1034_v13 = vld [vmem:[%s3056_s4 + $0x8] sm:$0xff] }
 0x763   :  { %v496_v15 = vpop.permute.xlu1 %495 }
 0x764   :  { %v498_v16 = vadd.f32 %v496_v15, %v488_v14  ;;  %v2415_v14 = vpack.c.bf16 %v1034_v13, %v1033_v11 }
 0x766   :  { %2502 = vtanh.f32 %v498_v16 }
 0x770   :  { %v2503_v17 = vpop.eup %2502 }
 0x771   :  { %501 = vrot.lane.b32.xlu0 %v2503_v17, %s2662_s28 }
 0x7e3   :  { %v502_v18 = vpop.permute.xlu0 %501 }
 0x7e4   :  { %v504_v19 = vmul.f32 %v2501_v9, %v502_v18  ;;  %v1035_v18 = vld [vmem:[%s3056_s4 + $0x10] sm:$0xff] }
 0x7e6   :  { %506 = vrot.lane.b32.xlu1 %v504_v19, %s2663_s3  ;;  %v1036_v19 = vld [vmem:[%s3056_s4 + $0x18] sm:$0xff] }
 0x858   :  { %v507_v20 = vpop.permute.xlu1 %506 }
 0x859   :  { %509 = vst.msk [vmem:[#allocation2 + $0x10] sm:$0xff] %vm200_vm2, %v507_v20  ;;  %2213 = vmatmul.mubr.msk.f32.vlgmr.msra.gmra.mrb[4].mxu1 %vm200_vm2, %v507_v20  ;;  %v2419_v20 = vpack.c.bf16 %v1036_v19, %v1035_v18 }
 0x85a   :  { %2399 = vmatpush3.bf16.msra.mxu1 %v2729_v5  ;;  %2234 = vmatprep.mubr.msk.f32.mxu1 %vm2660_vm0, %v2661_v1 }
 0x85b   :  { %2400 = vmatprep.subr.bf16.mxu1 %v2659_v0 }
 0x85e   :  { %2402 = vmatpush3.bf16.msra.mxu1 %v2746_v10 }
 0x85f   :  { %2409 = vmatprep.subr.bf16.mxu1 %v2659_v0 }
 0x92c   :  { %v579_v22 = vpop.f32.mrb[4].mxu1 }
 0x92d   :  { %v583_v23 = vadd.f32 %v579_v22, %v164_v21  ;;  %v2214_v24 = vpop.f32.mrb[5].mxu1  ;;  %v1025_v22 = vld [vmem:[#allocation2] sm:$0xff] }
 0x92e   :  { %v1027_v24 = vld [vmem:[#allocation2 + $0x10] sm:$0xff] }
 0x92f   :  { %2504 = vtanh.f32 %v583_v23  ;;  %v2023_v26 = vmul.f32 -1.442695, %v583_v23  ;;  %v1026_v23 = vld [vmem:[#allocation2 + $0x8] sm:$0xff] }
 0x931   :  { %2506 = vpow2.f32 %v2023_v26 }
 0x939   :  { %v2505_v25 = vpop.eup %2504 }
 0x93a   :  { %593 = vrot.lane.b32.xlu0 %v2505_v25, %s2662_s28 }
 0x93b   :  { %v2507_v27 = vpop.eup %2506 }
 0x93c   :  { %v587_v28 = vadd.f32 1.0, %v2507_v27 }
 0x93e   :  { %2508 = vrcp.f32 %v587_v28  ;;  %v179_v28 = vadd.f32 %v2766_v12, %v2818_v60 }
 0x948   :  { %v2509_v29 = vpop.eup %2508 }
 0x949   :  { %v591_v32 = vmul.f32 %v2509_v29, %v498_v16 }
 0x9ac   :  { %v594_v30 = vpop.permute.xlu0 %593 }
 0x9ad   :  { %v596_v31 = vmul.f32 %v2509_v29, %v594_v30 }
 0x9af   :  { %598 = vrot.lane.b32.xlu1 %v596_v31, %s2663_s3 }
 0xa21   :  { %v599_v33 = vpop.permute.xlu1 %598 }
 0xa22   :  { %v601_v34 = vadd.f32 %v599_v33, %v591_v32 }
 0xa24   :  { %2510 = vtanh.f32 %v601_v34 }
 0xa2e   :  { %v2511_v35 = vpop.eup %2510 }
 0xa2f   :  { %604 = vrot.lane.b32.xlu0 %v2511_v35, %s2662_s28 }
 0xaa1   :  { %v605_v36 = vpop.permute.xlu0 %604 }
 0xaa2   :  { %v607_v37 = vmul.f32 %v2509_v29, %v605_v36 }
 0xaa4   :  { %609 = vrot.lane.b32.xlu1 %v607_v37, %s2663_s3 }
 0xb16   :  { %v610_v38 = vpop.permute.xlu1 %609 }
 0xb17   :  { %612 = vst.msk [vmem:[#allocation2 + $0x18] sm:$0xff] %vm200_vm2, %v610_v38  ;;  %2224 = vmatmul.mubr.msk.f32.vlgmr.msra.gmra.mrb[10].mxu0 %vm200_vm2, %v610_v38 }
 0xb18   :  { %2405 = vmatpush3.bf16.msra.mxu0 %v2729_v5  ;;  %2245 = vmatprep.mubr.msk.f32.mxu0 %vm2660_vm0, %v2661_v1 }
 0xb19   :  { %2406 = vmatprep.subr.bf16.mxu0 %v2659_v0 }
 0xb1c   :  { %2408 = vmatpush3.bf16.msra.mxu0 %v2746_v10 }
 0xb1d   :  { %2416 = vmatprep.subr.bf16.mxu0 %v2415_v14 }
 0xb1e   :  { %v1028_v25 = vld [vmem:[#allocation2 + $0x18] sm:$0xff] }
 0xbea   :  { %v682_v40 = vpop.f32.mrb[10].mxu0 }
 0xbeb   :  { %v686_v41 = vadd.f32 %v682_v40, %v169_v39  ;;  %v2225_v42 = vpop.f32.mrb[11].mxu0 }
 0xbed   :  { %2512 = vtanh.f32 %v686_v41  ;;  %v2025_v44 = vmul.f32 -1.442695, %v686_v41 }
 0xbef   :  { %2514 = vpow2.f32 %v2025_v44 }
 0xbf7   :  { %v2513_v43 = vpop.eup %2512 }
 0xbf8   :  { %696 = vrot.lane.b32.xlu0 %v2513_v43, %s2662_s28 }
 0xbf9   :  { %v2515_v45 = vpop.eup %2514 }
 0xbfa   :  { %v690_v46 = vadd.f32 1.0, %v2515_v45 }
 0xbfc   :  { %2516 = vrcp.f32 %v690_v46 }
 0xc06   :  { %v2517_v47 = vpop.eup %2516 }
 0xc07   :  { %v694_v50 = vmul.f32 %v2517_v47, %v601_v34 }
 0xc6a   :  { %v697_v48 = vpop.permute.xlu0 %696 }
 0xc6b   :  { %v699_v49 = vmul.f32 %v2517_v47, %v697_v48  ;;  %v1181_v48 = vld [vmem:[#allocation4] sm:$0xff] }
 0xc6d   :  { %701 = vrot.lane.b32.xlu1 %v699_v49, %s2663_s3  ;;  %v1182_v49 = vld [vmem:[#allocation4 + $0x8] sm:$0xff] }
 0xcdf   :  { %v702_v51 = vpop.permute.xlu1 %701 }
 0xce0   :  { %v704_v52 = vadd.f32 %v702_v51, %v694_v50  ;;  %v2912_v50 = vpack.c.bf16 %v1182_v49, %v1181_v48  ;;  %v1183_v51 = vld [vmem:[#allocation4 + $0x10] sm:$0xff] }
 0xce2   :  { %2518 = vtanh.f32 %v704_v52 }
 0xcec   :  { %v2519_v53 = vpop.eup %2518 }
 0xced   :  { %707 = vrot.lane.b32.xlu0 %v2519_v53, %s2662_s28 }
 0xd5f   :  { %v708_v54 = vpop.permute.xlu0 %707 }
 0xd60   :  { %v710_v55 = vmul.f32 %v2517_v47, %v708_v54 }
 0xd62   :  { %712 = vrot.lane.b32.xlu1 %v710_v55, %s2663_s3 }
 0xdd4   :  { %v713_v56 = vpop.permute.xlu1 %712 }
 0xdd5   :  { %715 = vst.msk [vmem:[#allocation2 + $0x20] sm:$0xff] %vm200_vm2, %v713_v56  ;;  %2235 = vmatmul.mubr.msk.f32.vlgmr.msra.gmra.mrb[6].mxu1 %vm200_vm2, %v713_v56 }
 0xdd6   :  { %2411 = vmatpush3.bf16.msra.mxu1 %v2729_v5  ;;  %2256 = vmatprep.mubr.msk.f32.mxu1 %vm2660_vm0, %v2661_v1 }
 0xdd7   :  { %2412 = vmatprep.subr.bf16.mxu1 %v2659_v0 }
 0xdda   :  { %2414 = vmatpush3.bf16.msra.mxu1 %v2746_v10 }
 0xddb   :  { %2423 = vmatprep.subr.bf16.mxu1 %v2659_v0 }
 0xddc   :  { %v1029_v26 = vld [vmem:[#allocation2 + $0x20] sm:$0xff] }
 0xea8   :  { %v785_v61 = vpop.f32.mrb[6].mxu1 }
 0xea9   :  { %v789_v62 = vadd.f32 %v785_v61, %v174_v58  ;;  %v2236_v63 = vpop.f32.mrb[7].mxu1  ;;  %v184_v61 = vadd.f32 %v2816_v59, %v2766_v12 }
 0xeab   :  { %2520 = vtanh.f32 %v789_v62  ;;  %v2027_v5 = vmul.f32 -1.442695, %v789_v62 }
 0xead   :  { %2522 = vpow2.f32 %v2027_v5  ;;  %v2942_v5 = vld [vmem:[%s3058_s6] ss:$0 sm:$0xff]  ;;  %s2664_s6 = smov [#allocation7]  }
 0xeae   :  { %s1999_s25 = sshll.u32 %s2664_s6, 4  ;;  %s2000_s25 = int_to_ptr.vmem [resolvable:$true] %s1999_s25 }
 0xeaf   :  { %s2630_s26 = scalar_lea.vmem %s2000_s25, 128  ;;  %p2635_p9 = scmp.lt.s32.totalorder %s2000_s25, %s2000_s25 }
 0xeb0   :  { %p2631_p8 = scmp.ne.s32.totalorder %s2000_s25, %s2630_s26  ;;  %p2636_p10 = scmp.lt.s32.totalorder %s2630_s26, %s2630_s26 }
 0xeb2   :  { %p2637_p11 = por %p2636_p10, %p2635_p9 }
 0xeb4   :  { %p2638_p12 = pnand %p2637_p11, %p2631_p8 }
 0xeb5   :  { %v2521_v2 = vpop.eup %2520 }
 0xeb6   :  { %799 = vrot.lane.b32.xlu0 %v2521_v2, %s2662_s28 }
 0xeb7   :  { %v2523_v3 = vpop.eup %2522 }
 0xeb8   :  { %v793_v4 = vadd.f32 1.0, %v2523_v3 }
 0xeba   :  { %2524 = vrcp.f32 %v793_v4 }
 0xec4   :  { %v2525_v6 = vpop.eup %2524 }
 0xec5   :  { %v797_v8 = vmul.f32 %v2525_v6, %v704_v52  ;;  %v1184_v52 = vld [vmem:[#allocation4 + $0x18] sm:$0xff] }
 0xec6   :  { %v2916_v53 = vpack.c.bf16 %v1184_v52, %v1183_v51 }
 0xf28   :  { %v800_v7 = vpop.permute.xlu0 %799 }
 0xf29   :  { %v802_v10 = vmul.f32 %v2525_v6, %v800_v7 }
 0xf2b   :  { %804 = vrot.lane.b32.xlu1 %v802_v10, %s2663_s3 }
 0xf9d   :  { %v805_v9 = vpop.permute.xlu1 %804 }
 0xf9e   :  { %v807_v57 = vadd.f32 %v805_v9, %v797_v8 }
 0xfa0   :  { %2526 = vtanh.f32 %v807_v57 }
 0xfaa   :  { %v2527_v15 = vpop.eup %2526 }
 0xfab   :  { %810 = vrot.lane.b32.xlu0 %v2527_v15, %s2662_s28 }
0x101d   :  { %v811_v16 = vpop.permute.xlu0 %810 }
0x101e   :  { %v813_v17 = vmul.f32 %v2525_v6, %v811_v16 }
0x1020   :  { %815 = vrot.lane.b32.xlu1 %v813_v17, %s2663_s3 }
0x1092   :  { %v816_v21 = vpop.permute.xlu1 %815 }
0x1093   :  { %818 = vst.msk [vmem:[#allocation2 + $0x28] sm:$0xff] %vm200_vm2, %v816_v21  ;;  %2246 = vmatmul.mubr.msk.f32.vlgmr.msra.gmra.mrb[12].mxu0 %vm200_vm2, %v816_v21 }
0x1094   :  { %2418 = vmatpush3.bf16.msra.mxu0 %v2415_v14  ;;  %2267 = vmatprep.mubr.msk.f32.mxu0 %vm200_vm2, %v1025_v22 }
0x1095   :  { %2420 = vmatprep.subr.bf16.mxu0 %v2419_v20 }
0x1098   :  { %2422 = vmatpush3.bf16.msra.mxu0 %v2419_v20 }
0x1099   :  { %2435 = vmatprep.subr.bf16.mxu0 %v2659_v0 }
0x109a   :  { %v1030_v27 = vld [vmem:[#allocation2 + $0x28] sm:$0xff] }
0x109b   :  { %2268 = vmatmul.mubr.msk.f32.vlgmr.msra.gmra.mrb[14].mxu0 %vm200_vm2, %v1026_v23 }
0x109c   :  { %2270 = vmatprep.mubr.msk.f32.mxu0 %vm200_vm2, %v1027_v24  ;;  %2437 = vmatpush3.bf16.msra.mxu0 %v2912_v50 }
0x109d   :  { %2438 = vmatprep.subr.bf16.mxu0 %v2659_v0 }
0x109f   :  { %2271 = vmatmul.mubr.msk.f32.gmra.mrb[16].mxu0 %vm200_vm2, %v1028_v25 }
0x10a0   :  { %2273 = vmatprep.mubr.msk.f32.mxu0 %vm200_vm2, %v1029_v26  ;;  %2440 = vmatpush3.bf16.msra.mxu0 %v2916_v53 }
0x10a1   :  { %2447 = vmatprep.subr.bf16.mxu0 %v2659_v0 }
0x10a3   :  { %2274 = vmatmul.mubr.msk.f32.gmra.mrb[18].mxu0 %vm200_vm2, %v1030_v27 }
0x1166   :  { %v888_v29 = vpop.f32.mrb[12].mxu0 }
0x1167   :  { %v892_v30 = vadd.f32 %v888_v29, %v179_v28  ;;  %v2247_v31 = vpop.f32.mrb[13].mxu0 }
0x1169   :  { %2528 = vtanh.f32 %v892_v30  ;;  %v2029_v39 = vmul.f32 -1.442695, %v892_v30 }
0x116b   :  { %2530 = vpow2.f32 %v2029_v39 }
0x116e   :  { %v2896_v32 = vpop.f32.mrb[14].mxu0 }
0x116f   :  { %v1134_v33 = vpop.f32.mrb[15].mxu0 }
0x1170   :  { %v1135_v3 = vadd.f32 %v2942_v5, %v1134_v33 }
0x1172   :  { %v2898_v34 = vpop.f32.mrb[16].mxu0 }
0x1173   :  { %v2529_v35 = vpop.eup %2528  ;;  %v2900_v36 = vpop.f32.mrb[17].mxu0 }
0x1174   :  { %902 = vrot.lane.b32.xlu0 %v2529_v35, %s2662_s28  ;;  %v1140_v35 = vadd.f32 %v2896_v32, %v2942_v5 }
0x1175   :  { %v2531_v60 = vpop.eup %2530 }
0x1176   :  { %v2903_v37 = vpop.f32.mrb[18].mxu0  ;;  %v896_v40 = vadd.f32 1.0, %v2531_v60 }
0x1177   :  { %v2905_v38 = vpop.f32.mrb[19].mxu0 }
0x1178   :  { %2532 = vrcp.f32 %v896_v40 }
0x1182   :  { %v2533_v41 = vpop.eup %2532 }
0x1183   :  { %v900_v44 = vmul.f32 %v2533_v41, %v807_v57 }
0x11e6   :  { %v903_v42 = vpop.permute.xlu0 %902 }
0x11e7   :  { %v905_v43 = vmul.f32 %v2533_v41, %v903_v42 }
0x11e9   :  { %907 = vrot.lane.b32.xlu1 %v905_v43, %s2663_s3 }
0x125b   :  { %v908_v45 = vpop.permute.xlu1 %907 }
0x125c   :  { %v2908_v46 = vadd.f32 %v908_v45, %v900_v44 }
0x125e   :  { %2534 = vtanh.f32 %v2908_v46 }
0x1268   :  { %v2535_v47 = vpop.eup %2534 }
0x1269   :  { %913 = vrot.lane.b32.xlu0 %v2535_v47, %s2662_s28 }
0x12db   :  { %v914_v54 = vpop.permute.xlu0 %913 }
0x12dc   :  { %v916_v55 = vmul.f32 %v2533_v41, %v914_v54 }
0x12de   :  { %918 = vrot.lane.b32.xlu1 %v916_v55, %s2663_s3 }
0x1350   :  { %v919_v56 = vpop.permute.xlu1 %918 }
0x1351   :  { %921 = vst.msk [vmem:[#allocation2 + $0x30] sm:$0xff] %vm200_vm2, %v919_v56  ;;  %2257 = vmatmul.mubr.msk.f32.vlgmr.msra.gmra.mrb[8].mxu1 %vm200_vm2, %v919_v56 }
0x1352   :  { %2425 = vmatpush3.bf16.msra.mxu1 %v2912_v50  ;;  %2287 = vmatprep.mubr.msk.f32.mxu1 %vm2660_vm0, %v2661_v1 }
0x1353   :  { %2426 = vmatprep.subr.bf16.mxu1 %v2659_v0 }
0x1356   :  { %2428 = vmatpush3.bf16.msra.mxu1 %v2916_v53 }
0x1357   :  { %2429 = vmatprep.subr.bf16.mxu1 %v2659_v0 }
0x1358   :  { %v1031_v58 = vld [vmem:[#allocation2 + $0x30] sm:$0xff] }
0x1359   :  { %2288 = vmatmul.mubr.f32.vlgmr.msra.gmra.mrb[10].mxu1 %v2661_v1  ;;  %2276 = vmatprep.mubr.msk.f32.mxu0 %vm200_vm2, %v1031_v58 }
0x135a   :  { %2431 = vmatpush3.bf16.msra.mxu1 %v2912_v50  ;;  %2298 = vmatprep.mubr.msk.f32.mxu1 %vm2660_vm0, %v2661_v1 }
0x135b   :  { %2432 = vmatprep.subr.bf16.mxu1 %v2659_v0 }
0x135e   :  { %2434 = vmatpush3.bf16.msra.mxu1 %v2916_v53 }
0x135f   :  { %2441 = vmatprep.subr.bf16.mxu1 %v2659_v0 }
0x1424   :  { %v991_v62 = vpop.f32.mrb[8].mxu1 }
0x1425   :  { %v995_v63 = vadd.f32 %v991_v62, %v184_v61  ;;  %v2258_v2 = vpop.f32.mrb[9].mxu1 }
0x1427   :  { %v2031_v18 = vmul.f32 -1.442695, %v995_v63 }
0x142c   :  { %v1252_v4 = vpop.f32.mrb[10].mxu1 }
0x142d   :  { %v1256_v6 = vadd.f32 %v1252_v4, %v1135_v3  ;;  %v2289_v7 = vpop.f32.mrb[11].mxu1 }
0x142f   :  { %2536 = vtanh.f32 %v1256_v6  ;;  %v2041_v8 = vmul.f32 -1.442695, %v1256_v6 }
0x1431   :  { %2538 = vpow2.f32 %v2041_v8 }
0x1439   :  { %v2537_v10 = vpop.eup %2536 }
0x143a   :  { %1266 = vrot.lane.b32.xlu0 %v2537_v10, %s2662_s28 }
0x143b   :  { %v2539_v12 = vpop.eup %2538 }
0x143c   :  { %v1260_v59 = vadd.f32 1.0, %v2539_v12 }
0x143e   :  { %2540 = vrcp.f32 %v1260_v59 }
0x1448   :  { %v2541_v9 = vpop.eup %2540 }
0x1449   :  { %v1264_v13 = vmul.f32 0.0, %v2541_v9 }
0x14ac   :  { %v1267_v57 = vpop.permute.xlu0 %1266 }
0x14ad   :  { %v1269_v11 = vmul.f32 %v2541_v9, %v1267_v57 }
0x14af   :  { %1271 = vrot.lane.b32.xlu1 %v1269_v11, %s2663_s3 }
0x1521   :  { %v1272_v14 = vpop.permute.xlu1 %1271 }
0x1522   :  { %v1274_v15 = vadd.f32 %v1272_v14, %v1264_v13 }
0x1524   :  { %2542 = vtanh.f32 %v1274_v15 }
0x1525   :  { %2544 = vtanh.f32 %v995_v63  ;;  %v1145_v63 = vadd.f32 %v2942_v5, %v2900_v36 }
0x1526   :  { %2546 = vpow2.f32 %v2031_v18 }
0x152e   :  { %v2543_v16 = vpop.eup %2542 }
0x152f   :  { %1277 = vrot.lane.b32.xlu0 %v2543_v16, %s2662_s28  ;;  %v2545_v17 = vpop.eup %2544 }
0x1530   :  { %v2547_v19 = vpop.eup %2546 }
0x1531   :  { %v999_v20 = vadd.f32 1.0, %v2547_v19 }
0x1533   :  { %1005 = vrot.lane.b32.xlu0 %v2545_v17, %s2662_s28  ;;  %2548 = vrcp.f32 %v999_v20  ;;  %v1150_v17 = vadd.f32 %v2898_v34, %v2942_v5 }
0x153d   :  { %v2549_v23 = vpop.eup %2548 }
0x153e   :  { %v1003_v27 = vmul.f32 %v2549_v23, %v2908_v46 }
0x15a1   :  { %v1278_v21 = vpop.permute.xlu0 %1277 }
0x15a2   :  { %v1280_v22 = vmul.f32 %v2541_v9, %v1278_v21 }
0x15a4   :  { %1283 = vrot.lane.b32.xlu1 %v1280_v22, %s2663_s3 }
0x15a5   :  { %v1006_v24 = vpop.permute.xlu0 %1005 }
0x15a6   :  { %v1008_v25 = vmul.f32 %v2549_v23, %v1006_v24 }
0x15a8   :  { %1010 = vrot.lane.b32.xlu0 %v1008_v25, %s2663_s3 }
0x1616   :  { %v1284_v26 = vpop.permute.xlu1 %1283 }
0x1617   :  { %2299 = vmatmul.mubr.msk.f32.vlgmr.msra.gmra.mrb[12].mxu1 %vm200_vm2, %v1284_v26 }
0x1618   :  { %2443 = vmatpush3.bf16.msra.mxu1 %v2912_v50  ;;  %2320 = vmatprep.mubr.msk.f32.mxu1 %vm2660_vm0, %v2661_v1 }
0x1619   :  { %2444 = vmatprep.subr.bf16.mxu1 %v2659_v0 }
0x161a   :  { %v1011_v28 = vpop.permute.xlu0 %1010 }
0x161b   :  { %v1013_v29 = vadd.f32 %v1011_v28, %v1003_v27 }
0x161c   :  { %2446 = vmatpush3.bf16.msra.mxu1 %v2916_v53 }
0x161d   :  { %2550 = vtanh.f32 %v1013_v29  ;;  %2453 = vmatprep.subr.bf16.mxu1 %v2659_v0 }
0x1627   :  { %v2551_v30 = vpop.eup %2550 }
0x1628   :  { %1016 = vrot.lane.b32.xlu0 %v2551_v30, %s2662_s28 }
0x169a   :  { %v1017_v31 = vpop.permute.xlu0 %1016 }
0x169b   :  { %v1019_v33 = vmul.f32 %v2549_v23, %v1017_v31 }
0x169d   :  { %1021 = vrot.lane.b32.xlu0 %v1019_v33, %s2663_s3 }
0x16ea   :  { %v1353_v39 = vpop.f32.mrb[12].mxu1 }
0x16eb   :  { %v1357_v60 = vadd.f32 %v1353_v39, %v1140_v35  ;;  %v2300_v40 = vpop.f32.mrb[13].mxu1  ;;  %v1155_v39 = vadd.f32 %v2942_v5, %v2905_v38 }
0x16ed   :  { %2552 = vtanh.f32 %v1357_v60  ;;  %v2043_v44 = vmul.f32 -1.442695, %v1357_v60 }
0x16ef   :  { %2554 = vpow2.f32 %v2043_v44 }
0x16f7   :  { %v2553_v41 = vpop.eup %2552 }
0x16f8   :  { %1367 = vrot.lane.b32.xlu1 %v2553_v41, %s2662_s28 }
0x16f9   :  { %v2555_v45 = vpop.eup %2554 }
0x16fa   :  { %v1361_v32 = vadd.f32 1.0, %v2555_v45 }
0x16fc   :  { %2556 = vrcp.f32 %v1361_v32 }
0x1706   :  { %v2557_v46 = vpop.eup %2556 }
0x1707   :  { %v1365_v49 = vmul.f32 %v2557_v46, %v1274_v15 }
0x170f   :  { %v1022_v42 = vpop.permute.xlu0 %1021 }
0x1710   :  { %1024 = vst.msk [vmem:[#allocation2 + $0x38] sm:$0xff] %vm200_vm2, %v1022_v42 }
0x1717   :  { %v1032_v43 = vld [vmem:[#allocation2 + $0x38] sm:$0xff] }
0x1718   :  { %2277 = vmatmul.mubr.msk.f32.gmra.mrb[20].mxu0 %vm200_vm2, %v1032_v43 }
0x1719   :  { %2309 = vmatprep.mubr.msk.f32.mxu0 %vm2660_vm0, %v2661_v1 }
0x176a   :  { %v1368_v47 = vpop.permute.xlu1 %1367 }
0x176b   :  { %v1370_v48 = vmul.f32 %v2557_v46, %v1368_v47 }
0x176d   :  { %1372 = vrot.lane.b32.xlu1 %v1370_v48, %s2663_s3 }
0x17df   :  { %v1373_v51 = vpop.permute.xlu1 %1372 }
0x17e0   :  { %v1375_v52 = vadd.f32 %v1373_v51, %v1365_v49 }
0x17e2   :  { %2558 = vtanh.f32 %v1375_v52 }
0x17eb   :  { %v2969_v54 = vpop.f32.mrb[20].mxu0 }
0x17ec   :  { %v2559_v55 = vpop.eup %2558  ;;  %v2971_v56 = vpop.f32.mrb[21].mxu0 }
0x17ed   :  { %1378 = vrot.lane.b32.xlu1 %v2559_v55, %s2662_s28 }
0x185f   :  { %v1379_v58 = vpop.permute.xlu1 %1378 }
0x1860   :  { %v1381_v61 = vmul.f32 %v2557_v46, %v1379_v58 }
0x1862   :  { %1384 = vrot.lane.b32.xlu1 %v1381_v61, %s2663_s3  ;;  %v1160_v61 = vadd.f32 %v2903_v37, %v2942_v5 }
0x18d4   :  { %v1385_v62 = vpop.permute.xlu1 %1384 }
0x18d5   :  { %2310 = vmatmul.mubr.msk.f32.vlgmr.msra.gmra.mrb[22].mxu0 %vm200_vm2, %v1385_v62 }
0x18d6   :  { %2449 = vmatpush3.bf16.msra.mxu0 %v2912_v50  ;;  %2331 = vmatprep.mubr.msk.f32.mxu0 %vm2660_vm0, %v2661_v1 }
0x18d7   :  { %2450 = vmatprep.subr.bf16.mxu0 %v2659_v0 }
0x18da   :  { %2452 = vmatpush3.bf16.msra.mxu0 %v2916_v53 }
0x18db   :  { %2459 = vmatprep.subr.bf16.mxu0 %v2659_v0 }
0x19a8   :  { %v1454_v2 = vpop.f32.mrb[22].mxu0 }
0x19a9   :  { %v1458_v3 = vadd.f32 %v1454_v2, %v1145_v63  ;;  %v2311_v4 = vpop.f32.mrb[23].mxu0 }
0x19ab   :  { %2560 = vtanh.f32 %v1458_v3  ;;  %v2045_v7 = vmul.f32 -1.442695, %v1458_v3 }
0x19ad   :  { %2562 = vpow2.f32 %v2045_v7 }
0x19b5   :  { %v2561_v6 = vpop.eup %2560 }
0x19b6   :  { %1468 = vrot.lane.b32.xlu0 %v2561_v6, %s2662_s28 }
0x19b7   :  { %v2563_v10 = vpop.eup %2562 }
0x19b8   :  { %v1462_v8 = vadd.f32 1.0, %v2563_v10 }
0x19ba   :  { %2564 = vrcp.f32 %v1462_v8 }
0x19c4   :  { %v2565_v12 = vpop.eup %2564 }
0x19c5   :  { %v1466_v57 = vmul.f32 %v2565_v12, %v1375_v52 }
0x1a28   :  { %v1469_v59 = vpop.permute.xlu0 %1468 }
0x1a29   :  { %v1471_v9 = vmul.f32 %v2565_v12, %v1469_v59 }
0x1a2b   :  { %1473 = vrot.lane.b32.xlu1 %v1471_v9, %s2663_s3 }
0x1a9d   :  { %v1474_v11 = vpop.permute.xlu1 %1473 }
0x1a9e   :  { %v1476_v36 = vadd.f32 %v1474_v11, %v1466_v57  ;;  %v1165_v57 = vadd.f32 %v2942_v5, %v2971_v56 }
0x1aa0   :  { %2566 = vtanh.f32 %v1476_v36 }
0x1aaa   :  { %v2567_v13 = vpop.eup %2566 }
0x1aab   :  { %1479 = vrot.lane.b32.xlu0 %v2567_v13, %s2662_s28 }
0x1b1d   :  { %v1480_v14 = vpop.permute.xlu0 %1479 }
0x1b1e   :  { %v1482_v15 = vmul.f32 %v2565_v12, %v1480_v14 }
0x1b20   :  { %1485 = vrot.lane.b32.xlu1 %v1482_v15, %s2663_s3 }
0x1b92   :  { %v1486_v16 = vpop.permute.xlu1 %1485 }
0x1b93   :  { %2321 = vmatmul.mubr.msk.f32.vlgmr.msra.gmra.mrb[14].mxu1 %vm200_vm2, %v1486_v16 }
0x1b94   :  { %2455 = vmatpush3.bf16.msra.mxu1 %v2912_v50  ;;  %2342 = vmatprep.mubr.msk.f32.mxu1 %vm2660_vm0, %v2661_v1 }
0x1b95   :  { %2456 = vmatprep.subr.bf16.mxu1 %v2659_v0 }
0x1b98   :  { %2458 = vmatpush3.bf16.msra.mxu1 %v2916_v53 }
0x1b99   :  { %2465 = vmatprep.subr.bf16.mxu1 %v2659_v0 }
0x1c66   :  { %v1555_v18 = vpop.f32.mrb[14].mxu1 }
0x1c67   :  { %v1559_v19 = vadd.f32 %v1555_v18, %v1150_v17  ;;  %v2322_v20 = vpop.f32.mrb[15].mxu1 }
0x1c69   :  { %2568 = vtanh.f32 %v1559_v19  ;;  %v2047_v22 = vmul.f32 -1.442695, %v1559_v19 }
0x1c6b   :  { %2570 = vpow2.f32 %v2047_v22 }
0x1c73   :  { %v2569_v21 = vpop.eup %2568 }
0x1c74   :  { %1569 = vrot.lane.b32.xlu0 %v2569_v21, %s2662_s28 }
0x1c75   :  { %v2571_v23 = vpop.eup %2570 }
0x1c76   :  { %v1563_v24 = vadd.f32 1.0, %v2571_v23 }
0x1c78   :  { %2572 = vrcp.f32 %v1563_v24 }
0x1c82   :  { %v2573_v25 = vpop.eup %2572 }
0x1c83   :  { %v1567_v28 = vmul.f32 %v2573_v25, %v1476_v36 }
0x1ce6   :  { %v1570_v26 = vpop.permute.xlu0 %1569 }
0x1ce7   :  { %v1572_v27 = vmul.f32 %v2573_v25, %v1570_v26 }
0x1ce9   :  { %1574 = vrot.lane.b32.xlu1 %v1572_v27, %s2663_s3  ;;  %v1170_v27 = vadd.f32 %v2969_v54, %v2942_v5 }
0x1d5b   :  { %v1575_v29 = vpop.permute.xlu1 %1574 }
0x1d5c   :  { %v1577_v34 = vadd.f32 %v1575_v29, %v1567_v28 }
0x1d5e   :  { %2574 = vtanh.f32 %v1577_v34 }
0x1d68   :  { %v2575_v30 = vpop.eup %2574 }
0x1d69   :  { %1580 = vrot.lane.b32.xlu0 %v2575_v30, %s2662_s28 }
0x1ddb   :  { %v1581_v31 = vpop.permute.xlu0 %1580 }
0x1ddc   :  { %v1583_v33 = vmul.f32 %v2573_v25, %v1581_v31 }
0x1dde   :  { %1586 = vrot.lane.b32.xlu1 %v1583_v33, %s2663_s3 }
0x1e50   :  { %v1587_v35 = vpop.permute.xlu1 %1586 }
0x1e51   :  { %2332 = vmatmul.mubr.msk.f32.vlgmr.msra.gmra.mrb[24].mxu0 %vm200_vm2, %v1587_v35 }
0x1e52   :  { %2461 = vmatpush3.bf16.msra.mxu0 %v2912_v50  ;;  %2353 = vmatprep.mubr.msk.f32.mxu0 %vm2660_vm0, %v2661_v1 }
0x1e53   :  { %2462 = vmatprep.subr.bf16.mxu0 %v2659_v0 }
0x1e56   :  { %2464 = vmatpush3.bf16.msra.mxu0 %v2916_v53 }
0x1f24   :  { %v1656_v60 = vpop.f32.mrb[24].mxu0 }
0x1f25   :  { %v1660_v40 = vadd.f32 %v1656_v60, %v1155_v39  ;;  %v2333_v41 = vpop.f32.mrb[25].mxu0 }
0x1f27   :  { %2576 = vtanh.f32 %v1660_v40  ;;  %v2049_v43 = vmul.f32 -1.442695, %v1660_v40 }
0x1f29   :  { %2578 = vpow2.f32 %v2049_v43 }
0x1f31   :  { %v2577_v42 = vpop.eup %2576 }
0x1f32   :  { %1670 = vrot.lane.b32.xlu0 %v2577_v42, %s2662_s28 }
0x1f33   :  { %v2579_v44 = vpop.eup %2578 }
0x1f34   :  { %v1664_v45 = vadd.f32 1.0, %v2579_v44 }
0x1f36   :  { %2580 = vrcp.f32 %v1664_v45 }
0x1f40   :  { %v2581_v32 = vpop.eup %2580 }
0x1f41   :  { %v1668_v48 = vmul.f32 %v2581_v32, %v1577_v34 }
0x1fa4   :  { %v1671_v46 = vpop.permute.xlu0 %1670 }
0x1fa5   :  { %v1673_v47 = vmul.f32 %v2581_v32, %v1671_v46 }
0x1fa7   :  { %1675 = vrot.lane.b32.xlu1 %v1673_v47, %s2663_s3 }
0x2019   :  { %v1676_v49 = vpop.permute.xlu1 %1675 }
0x201a   :  { %v1678_v38 = vadd.f32 %v1676_v49, %v1668_v48 }
0x201c   :  { %2582 = vtanh.f32 %v1678_v38 }
0x2026   :  { %v2583_v51 = vpop.eup %2582 }
0x2027   :  { %1681 = vrot.lane.b32.xlu0 %v2583_v51, %s2662_s28 }
0x2099   :  { %v1682_v52 = vpop.permute.xlu0 %1681 }
0x209a   :  { %v1684_v55 = vmul.f32 %v2581_v32, %v1682_v52 }
0x209c   :  { %1687 = vrot.lane.b32.xlu1 %v1684_v55, %s2663_s3 }
0x210e   :  { %v1688_v58 = vpop.permute.xlu1 %1687 }
0x210f   :  { %2343 = vmatmul.mubr.msk.f32.vlgmr.msra.gmra.mrb[16].mxu1 %vm200_vm2, %v1688_v58 }
0x2110   :  { %2467 = vmatpush3.bf16.msra.mxu1 %v2912_v50  ;;  %2364 = vmatprep.mubr.msk.f32.mxu1 %vm2660_vm0, %v2661_v1 }
0x2111   :  { %2468 = vmatprep.subr.bf16.mxu1 %v2659_v0 }
0x2114   :  { %2470 = vmatpush3.bf16.msra.mxu1 %v2916_v53 }
0x21e2   :  { %v1757_v62 = vpop.f32.mrb[16].mxu1 }
0x21e3   :  { %v1761_v63 = vadd.f32 %v1757_v62, %v1160_v61  ;;  %v2344_v2 = vpop.f32.mrb[17].mxu1 }
0x21e5   :  { %2584 = vtanh.f32 %v1761_v63  ;;  %v2051_v4 = vmul.f32 -1.442695, %v1761_v63 }
0x21e7   :  { %2586 = vpow2.f32 %v2051_v4 }
0x21ef   :  { %v2585_v3 = vpop.eup %2584 }
0x21f0   :  { %1771 = vrot.lane.b32.xlu0 %v2585_v3, %s2662_s28 }
0x21f1   :  { %v2587_v50 = vpop.eup %2586 }
0x21f2   :  { %v1765_v6 = vadd.f32 1.0, %v2587_v50 }
0x21f4   :  { %2588 = vrcp.f32 %v1765_v6 }
0x21fe   :  { %v2589_v1 = vpop.eup %2588 }
0x21ff   :  { %v1769_v53 = vmul.f32 %v2589_v1, %v1678_v38 }
0x2262   :  { %v1772_v7 = vpop.permute.xlu0 %1771 }
0x2263   :  { %v1774_v0 = vmul.f32 %v2589_v1, %v1772_v7 }
0x2265   :  { %1776 = vrot.lane.b32.xlu1 %v1774_v0, %s2663_s3 }
0x22d7   :  { %v1777_v10 = vpop.permute.xlu1 %1776 }
0x22d8   :  { %v1779_v37 = vadd.f32 %v1777_v10, %v1769_v53 }
0x22da   :  { %2590 = vtanh.f32 %v1779_v37 }
0x22e4   :  { %v2591_v8 = vpop.eup %2590 }
0x22e5   :  { %1782 = vrot.lane.b32.xlu0 %v2591_v8, %s2662_s28 }
0x2357   :  { %v1783_v12 = vpop.permute.xlu0 %1782 }
0x2358   :  { %v1785_v59 = vmul.f32 %v2589_v1, %v1783_v12 }
0x235a   :  { %1788 = vrot.lane.b32.xlu1 %v1785_v59, %s2663_s3 }
0x23cc   :  { %v1789_v9 = vpop.permute.xlu1 %1788 }
0x23cd   :  { %2354 = vmatmul.mubr.msk.f32.vlgmr.msra.gmra.mrb[26].mxu0 %vm200_vm2, %v1789_v9 }
0x24a0   :  { %v1858_v11 = vpop.f32.mrb[26].mxu0 }
0x24a1   :  { %v1862_v36 = vadd.f32 %v1858_v11, %v1165_v57  ;;  %v2355_v13 = vpop.f32.mrb[27].mxu0 }
0x24a3   :  { %2592 = vtanh.f32 %v1862_v36  ;;  %v2053_v15 = vmul.f32 -1.442695, %v1862_v36 }
0x24a5   :  { %2594 = vpow2.f32 %v2053_v15 }
0x24ad   :  { %v2593_v14 = vpop.eup %2592 }
0x24ae   :  { %1872 = vrot.lane.b32.xlu0 %v2593_v14, %s2662_s28 }
0x24af   :  { %v2595_v16 = vpop.eup %2594 }
0x24b0   :  { %v1866_v17 = vadd.f32 1.0, %v2595_v16 }
0x24b2   :  { %2596 = vrcp.f32 %v1866_v17 }
0x24bc   :  { %v2597_v18 = vpop.eup %2596 }
0x24bd   :  { %v1870_v21 = vmul.f32 %v2597_v18, %v1779_v37 }
0x2520   :  { %v1873_v19 = vpop.permute.xlu0 %1872 }
0x2521   :  { %v1875_v20 = vmul.f32 %v2597_v18, %v1873_v19 }
0x2523   :  { %1877 = vrot.lane.b32.xlu1 %v1875_v20, %s2663_s3 }
0x2595   :  { %v1878_v22 = vpop.permute.xlu1 %1877 }
0x2596   :  { %v1880_v56 = vadd.f32 %v1878_v22, %v1870_v21 }
0x2598   :  { %2598 = vtanh.f32 %v1880_v56 }
0x25a2   :  { %v2599_v23 = vpop.eup %2598 }
0x25a3   :  { %1883 = vrot.lane.b32.xlu0 %v2599_v23, %s2662_s28 }
0x2615   :  { %v1884_v24 = vpop.permute.xlu0 %1883 }
0x2616   :  { %v1886_v25 = vmul.f32 %v2597_v18, %v1884_v24 }
0x2618   :  { %1889 = vrot.lane.b32.xlu1 %v1886_v25, %s2663_s3 }
0x268a   :  { %v1890_v26 = vpop.permute.xlu1 %1889 }
0x268b   :  { %2365 = vmatmul.mubr.msk.f32.vlgmr.msra.gmra.mrb[18].mxu1 %vm200_vm2, %v1890_v26 }
0x275e   :  { %v1959_v28 = vpop.f32.mrb[18].mxu1 }
0x275f   :  { %v1963_v29 = vadd.f32 %v1959_v28, %v1170_v27  ;;  %v2366_v34 = vpop.f32.mrb[19].mxu1 }
0x2761   :  { %2600 = vtanh.f32 %v1963_v29  ;;  %v2055_v31 = vmul.f32 -1.442695, %v1963_v29 }
0x2763   :  { %2602 = vpow2.f32 %v2055_v31 }
0x276b   :  { %v2601_v30 = vpop.eup %2600 }
0x276c   :  { %1973 = vrot.lane.b32.xlu0 %v2601_v30, %s2662_s28 }
0x276d   :  { %v2603_v33 = vpop.eup %2602 }
0x276e   :  { %v1967_v35 = vadd.f32 1.0, %v2603_v33 }
0x2770   :  { %2604 = vrcp.f32 %v1967_v35 }
0x277a   :  { %v2605_v39 = vpop.eup %2604 }
0x277b   :  { %v1971_v41 = vmul.f32 %v2605_v39, %v1880_v56 }
0x27de   :  { %v1974_v60 = vpop.permute.xlu0 %1973 }
0x27df   :  { %v1976_v40 = vmul.f32 %v2605_v39, %v1974_v60 }
0x27e1   :  { %1978 = vrot.lane.b32.xlu1 %v1976_v40, %s2663_s3 }
0x2853   :  { %v1979_v42 = vpop.permute.xlu1 %1978 }
0x2854   :  { %v1981_v5 = vadd.f32 %v1979_v42, %v1971_v41 }
0x2856   :  { %2606 = vtanh.f32 %v1981_v5 }
0x2860   :  { %v2607_v54 = vpop.eup %2606 }
0x2861   :  { %1984 = vrot.lane.b32.xlu0 %v2607_v54, %s2662_s28 }
0x28d3   :  { %v1985_v43 = vpop.permute.xlu0 %1984 }
0x28d4   :  { %v1987_v44 = vmul.f32 %v2605_v39, %v1985_v43 }
0x28d6   :  { %1989 = vrot.lane.b32.xlu1 %v1987_v44, %s2663_s3 }
0x2948   :  { %v1990_v45 = vpop.permute.xlu1 %1989 }
0x2949   :  { %1992 = vst.msk [vmem:[#allocation7] sm:$0xff] %vm200_vm2, %v1990_v45 }
0x294a   :  { %2641 = shalt.err (!%p2638_p12)
}
0x294b   :  { %s2642_s27 = scalar_lea.hbm %s3059_s7, 128 }
0x294c   :  { %p2643_p13 = scmp.ne.s32.totalorder %s3059_s7, %s2642_s27  ;;  %p2646_p0 = scmp.lt.u32.totalorder %s2642_s27, %s3059_s7 }
0x294e   :  { %p2648_p1 = pnand %p2646_p0, %p2643_p13 }
0x2950   :  { %2651 = shalt.err (!%p2648_p1)
}
0x2951   :  { %2002 = dma.vmem_to_hbm [thread:$0]  %s2000_s25, 128, %s3059_s7, [#allocation6]  }
0x2952   :  { %2654 = dma.done.wait [#allocation6], 128  }
0x2953   :  { %2655 = vsyncadd [#allocation6], 4294967168 }
0x2954   :  { %2006 = vsyncpa [#allocation5], 1 }
0x2955   :  { %2007 = vsyncpa [#allocation6], 1 }

</bundles_post_ra>
